<compile_context>
chip_gen: v7x
topology: tpu7x:2x2x1
jax: 0.10.0
libtpu: 0.0.40
codegen_flags: <defaults>
</compile_context>

<pallas_src>
import functools

import jax
import jax.numpy as jnp
from jax import lax
from jax.experimental import pallas as pl
from jax.experimental.pallas import tpu as pltpu


# Operand dtype for the big MXU projections (GRU input projection, attention
# projection).  Set to jnp.bfloat16 on v6e/v7x for ~4x MXU throughput (accumulation
# stays f32 via preferred_element_type) after re-validating tolerances.
MATMUL_DTYPE = jnp.float32


def _vmem_budget_bytes():
    """Scoped-VMEM budget derived from the chip (don't hard-code 64 MiB)."""
    try:
        cap = int(pltpu.get_tpu_info().vmem_capacity_bytes)
    except Exception:
        cap = 0
    if cap <= 0:
        cap = 128 * 1024 * 1024
    # Leave ~25% headroom for double buffers / internal scratch; never ask >100 MiB.
    return min((cap * 3) // 4, 100 * 1024 * 1024)


_VMEM_BUDGET = _vmem_budget_bytes()


def _batch_tile(n, cap):
    """Largest tile <= cap dividing n with legal block dims (multiple of 8 or full)."""
    if n <= cap:
        return n
    for t in range(cap - cap % 8, 7, -8):
        if n % t == 0:
            return t
    return n


def _chunk_len(L, per_step_bytes, max_chunk):
    """Largest divisor of L whose per-chunk working set fits the VMEM budget."""
    cap = max(1, (_VMEM_BUDGET // 2) // max(per_step_bytes, 1))
    cap = int(min(cap, max_chunk, L))
    best = 1
    for d in range(1, cap + 1):
        if L % d == 0:
            best = d
    return best


# ---------------------------------------------------------------------------
# Bidirectional GRU kernel (time-chunked grid, register-carried hidden state)
# ---------------------------------------------------------------------------

def bigru_kernel(x_f_ref, x_b_ref, wih_f_ref, wih_b_ref, bih_f_ref, bih_b_ref,
                 whh_ref, bhn_ref, out_f_ref, out_b_ref,
                 h_scr, gi_f_scr, gi_b_scr, *, fuse_rec, mx_dtype):
    """One (batch-tile, time-chunk) grid step of a bidirectional single-layer GRU.

    x_f/x_b: (Lc, tn, Din) time-chunk of x in forward / backward chunk order.
    wih_*:   (Din, 3H) per-direction input projections, columns = [r z n].
    bih_*:   (1, 3H)   projection bias with the recurrent r/z biases folded in.
    whh:     (2H, 6H) block-diagonal (fuse_rec) or (2, H, 3H) stacked.
    bhn:     (1, 2H)   [b_hn_fwd | b_hn_bwd].
    out_f/out_b: (Lc, tn, H) per-direction outputs (concatenated downstream in VMEM).
    """
    Lc, tn, Din = x_f_ref.shape
    H = out_f_ref.shape[2]
    chunk = pl.program_id(1)

    # Reset the carried hidden state at the first time-chunk of every batch tile.
    @pl.when(chunk == 0)
    def _():
        h_scr[...] = jnp.zeros_like(h_scr)

    # Chunked input projection: one MXU matmul per direction per chunk, into a
    # bounded scratch (x itself streams HBM->VMEM via the BlockSpec pipeline).
    def project(x_ref, w_ref, b_ref, gi_scr):
        x2d = x_ref[...].reshape(Lc * tn, Din).astype(mx_dtype)
        gi = jnp.dot(x2d, w_ref[...].astype(mx_dtype),
                     preferred_element_type=jnp.float32) + b_ref[...]
        gi_scr[...] = gi.reshape(Lc, tn, 3 * H)

    project(x_f_ref, wih_f_ref, bih_f_ref, gi_f_scr)
    project(x_b_ref, wih_b_ref, bih_b_ref, gi_b_scr)

    # Hoist loop-invariant loads out of the recurrence.
    whh = whh_ref[...]
    bhn_f = bhn_ref[:, 0:H]
    bhn_b = bhn_ref[:, H:2 * H]

    def gates(gi, gh, bhn, h_prev):
        r = jax.nn.sigmoid(gi[:, 0:H] + gh[:, 0:H])
        z = jax.nn.sigmoid(gi[:, H:2 * H] + gh[:, H:2 * H])
        n = jnp.tanh(gi[:, 2 * H:3 * H] + r * (gh[:, 2 * H:3 * H] + bhn))
        return (1.0 - z) * n + z * h_prev

    def step(t, h):                                           # h: (tn, 2H) in vregs
        if fuse_rec:
            gh = jnp.dot(h, whh, preferred_element_type=jnp.float32)
            gh_f, gh_b = gh[:, 0:3 * H], gh[:, 3 * H:6 * H]
        else:
            gh_f = jnp.dot(h[:, 0:H], whh[0], preferred_element_type=jnp.float32)
            gh_b = jnp.dot(h[:, H:2 * H], whh[1], preferred_element_type=jnp.float32)
        h_f = gates(gi_f_scr[t], gh_f, bhn_f, h[:, 0:H])
        h_b = gates(gi_b_scr[Lc - 1 - t], gh_b, bhn_b, h[:, H:2 * H])
        out_f_ref[t] = h_f.astype(out_f_ref.dtype)
        out_b_ref[Lc - 1 - t] = h_b.astype(out_b_ref.dtype)
        return jnp.concatenate([h_f, h_b], axis=-1)

    # Hidden state rides the fori_loop carry; VMEM only at chunk boundaries.
    unroll = Lc if Lc <= 16 else 4
    h_last = lax.fori_loop(0, Lc, step, h_scr[...], unroll=unroll)
    h_scr[...] = h_last


def bigru(x, p, *, max_chunk=128, matmul_dtype=None):
    """x: (L, N, Din) -> (out_fwd, out_bwd), each (L, N, H), PyTorch nn.GRU math."""
    L, N, Din = x.shape
    H = p['whh_f'].shape[0]
    mx_dtype = MATMUL_DTYPE if matmul_dtype is None else matmul_dtype

    tn = _batch_tile(N, 256)
    # per-timestep resident bytes: x(f/b) double-buffered + gi scratch + out blocks
    per_step = tn * 4 * (4 * Din + 10 * H)
    Lc = _chunk_len(L, per_step, max_chunk)
    nb, C = N // tn, L // Lc

    # Fold the recurrent r/z biases into the projection bias (fewer broadcast-adds
    # in the serial loop); only b_hn stays inside the tanh path.
    zH = jnp.zeros((1, H), jnp.float32)
    bih_f = p['bih_f'] + jnp.concatenate([p['bhh_f'][:, 0:2 * H], zH], axis=1)
    bih_b = p['bih_b'] + jnp.concatenate([p['bhh_b'][:, 0:2 * H], zH], axis=1)
    bhn = jnp.concatenate([p['bhh_f'][:, 2 * H:], p['bhh_b'][:, 2 * H:]], axis=1)

    # Fused block-diagonal recurrent matmul (single MXU push per step) for small H;
    # two separate matmuls once H reaches the MXU K dim (avoid 2x zero-K waste).
    fuse_rec = H < 128
    if fuse_rec:
        zer = jnp.zeros((H, 3 * H), jnp.float32)
        whh = jnp.concatenate(
            [jnp.concatenate([p['whh_f'], zer], axis=1),
             jnp.concatenate([zer, p['whh_b']], axis=1)], axis=0)          # (2H, 6H)
        whh_spec = pl.BlockSpec((2 * H, 6 * H), lambda bi, c: (0, 0))
    else:
        whh = jnp.stack([p['whh_f'], p['whh_b']])                           # (2,H,3H)
        whh_spec = pl.BlockSpec((2, H, 3 * H), lambda bi, c: (0, 0, 0))

    full2 = lambda bi, c: (0, 0)
    kernel = functools.partial(bigru_kernel, fuse_rec=fuse_rec, mx_dtype=mx_dtype)

    # TODO(synk): on v7x (2 TensorCores) additionally split the independent fwd/bwd
    # directions across a parallel grid axis when nb == 1; on 1-core chips that
    # split doubles the serial recurrence length, so it is not the default here.
    return pl.pallas_call(
        kernel,
        out_shape=(jax.ShapeDtypeStruct((L, N, H), jnp.float32),
                   jax.ShapeDtypeStruct((L, N, H), jnp.float32)),
        grid=(nb, C),
        in_specs=[
            pl.BlockSpec((Lc, tn, Din), lambda bi, c: (c, bi, 0)),          # x fwd order
            pl.BlockSpec((Lc, tn, Din), lambda bi, c: (C - 1 - c, bi, 0)),  # x bwd order
            pl.BlockSpec((Din, 3 * H), full2),
            pl.BlockSpec((Din, 3 * H), full2),
            pl.BlockSpec((1, 3 * H), full2),
            pl.BlockSpec((1, 3 * H), full2),
            whh_spec,
            pl.BlockSpec((1, 2 * H), full2),
        ],
        out_specs=(pl.BlockSpec((Lc, tn, H), lambda bi, c: (c, bi, 0)),
                   pl.BlockSpec((Lc, tn, H), lambda bi, c: (C - 1 - c, bi, 0))),
        scratch_shapes=[pltpu.VMEM((tn, 2 * H), jnp.float32),
                        pltpu.VMEM((Lc, tn, 3 * H), jnp.float32),
                        pltpu.VMEM((Lc, tn, 3 * H), jnp.float32)],
        compiler_params=pltpu.CompilerParams(
            dimension_semantics=("parallel", "arbitrary"),
            vmem_limit_bytes=_VMEM_BUDGET),
    )(x, x, p['wih_f'], p['wih_b'], bih_f, bih_b, whh, bhn)


# ---------------------------------------------------------------------------
# LayerNorm + Attention (optionally fused with the final FC)
# ---------------------------------------------------------------------------

def _ln_attn_math(xf_ref, xb_ref, gamma_ref, beta_ref, wa_ref, ba_ref, wc_ref,
                  bc_ref, mx_dtype):
    # Concatenate the two GRU direction halves in VMEM (no HBM-level concat).
    x = jnp.concatenate([xf_ref[...], xb_ref[...]], axis=-1)             # (B, n, d)
    B, n, d = x.shape
    h = wa_ref.shape[1]

    # LayerNorm (eps = 1e-5, elementwise affine).
    mean = jnp.mean(x, axis=-1, keepdims=True)
    var = jnp.mean(jnp.square(x - mean), axis=-1, keepdims=True)
    xn = (x - mean) * lax.rsqrt(var + 1e-5)
    xn = xn * gamma_ref[...] + beta_ref[...]

    # attn = tanh(Linear(d -> h)) as one 2-D MXU matmul.
    a = jnp.tanh(jnp.dot(xn.reshape(B * n, d).astype(mx_dtype),
                         wa_ref[...].astype(mx_dtype),
                         preferred_element_type=jnp.float32) + ba_ref[...])
    a = a.reshape(B, n, h)

    # Context score + softmax over n; bc is a scalar read from SMEM.
    s = jnp.sum(a * wc_ref[...], axis=-1) + bc_ref[0, 0]                 # (B, n)
    s = s - jnp.max(s, axis=1, keepdims=True)
    e = jnp.exp(s)
    denom = jnp.sum(e, axis=1, keepdims=True)
    # EUP approximate reciprocal + one Newton step (~f32 accuracy, no divide unit).
    r = pl.reciprocal(denom, approx=True)
    r = r * (2.0 - denom * r)
    p = e * r

    # Weighted sum on VPU/XLU (avoids B separate M=1 MXU matmuls).
    out = jnp.sum(xn * p[:, :, None], axis=1)                            # (B, d)
    return out, p


def ln_attn_kernel(xf_ref, xb_ref, gamma_ref, beta_ref, wa_ref, ba_ref, wc_ref,
                   bc_ref, out_ref, score_ref, *, mx_dtype):
    out, p = _ln_attn_math(xf_ref, xb_ref, gamma_ref, beta_ref, wa_ref, ba_ref,
                           wc_ref, bc_ref, mx_dtype)
    out_ref[...] = out.astype(out_ref.dtype)
    score_ref[...] = p.astype(score_ref.dtype)


def ln_attn_fc_kernel(xf_ref, xb_ref, gamma_ref, beta_ref, wa_ref, ba_ref, wc_ref,
                      bc_ref, wfc_ref, bfc_ref, logits_ref, score_ref, *, mx_dtype):
    out, p = _ln_attn_math(xf_ref, xb_ref, gamma_ref, beta_ref, wa_ref, ba_ref,
                           wc_ref, bc_ref, mx_dtype)
    logits_ref[...] = (jnp.dot(out, wfc_ref[...], preferred_element_type=jnp.float32)
                       + bfc_ref[...]).astype(logits_ref.dtype)
    score_ref[...] = p.astype(score_ref.dtype)


def _attn_batch_tile(B, n, d, h):
    """VMEM-budget-aware batch tile for the attention kernels (v7x-safe)."""
    per_row = 4 * (6 * n * d + n * h + 2 * (d + n))
    cap = max(8, (_VMEM_BUDGET // 4) // max(per_row, 1))
    return _batch_tile(B, min(int(cap), 2048))


def _attn_specs(n, d, h, H, tb):
    full = lambda i: (0, 0)
    return [
        pl.BlockSpec((tb, n, H), lambda i: (i, 0, 0)),                   # fwd half
        pl.BlockSpec((tb, n, H), lambda i: (i, 0, 0)),                   # bwd half
        pl.BlockSpec((1, d), full),                                      # gamma
        pl.BlockSpec((1, d), full),                                      # beta
        pl.BlockSpec((d, h), full),                                      # wa
        pl.BlockSpec((1, h), full),                                      # ba
        pl.BlockSpec((1, h), full),                                      # wc
        pl.BlockSpec(memory_space=pltpu.MemorySpace.SMEM),               # bc scalar
    ]


def ln_attention(xf, xb, ln, attn, *, matmul_dtype=None):
    B, n, H = xf.shape
    d, h = 2 * H, attn['wa'].shape[1]
    mx_dtype = MATMUL_DTYPE if matmul_dtype is None else matmul_dtype
    tb = _attn_batch_tile(B, n, d, h)
    kernel = functools.partial(ln_attn_kernel, mx_dtype=mx_dtype)
    return pl.pallas_call(
        kernel,
        out_shape=(jax.ShapeDtypeStruct((B, d), jnp.float32),
                   jax.ShapeDtypeStruct((B, n), jnp.float32)),
        grid=(B // tb,),
        in_specs=_attn_specs(n, d, h, H, tb),
        out_specs=(pl.BlockSpec((tb, d), lambda i: (i, 0)),
                   pl.BlockSpec((tb, n), lambda i: (i, 0))),
        compiler_params=pltpu.CompilerParams(
            dimension_semantics=("parallel",),
            vmem_limit_bytes=_VMEM_BUDGET),
    )(xf, xb, ln['gamma'], ln['beta'], attn['wa'], attn['ba'], attn['wc'], attn['bc'])


def ln_attention_fc(xf, xb, ln, attn, fc, *, matmul_dtype=None):
    """Sentence-level LayerNorm + attention with the final FC fused as epilogue."""
    B, n, H = xf.shape
    d, h, c = 2 * H, attn['wa'].shape[1], fc['w'].shape[1]
    mx_dtype = MATMUL_DTYPE if matmul_dtype is None else matmul_dtype
    tb = _attn_batch_tile(B, n, d, h)
    full = lambda i: (0, 0)
    in_specs = _attn_specs(n, d, h, H, tb) + [
        pl.BlockSpec((d, c), full),
        pl.BlockSpec((1, c), full),
    ]
    kernel = functools.partial(ln_attn_fc_kernel, mx_dtype=mx_dtype)
    return pl.pallas_call(
        kernel,
        out_shape=(jax.ShapeDtypeStruct((B, c), jnp.float32),
                   jax.ShapeDtypeStruct((B, n), jnp.float32)),
        grid=(B // tb,),
        in_specs=in_specs,
        out_specs=(pl.BlockSpec((tb, c), lambda i: (i, 0)),
                   pl.BlockSpec((tb, n), lambda i: (i, 0))),
        compiler_params=pltpu.CompilerParams(
            dimension_semantics=("parallel",),
            vmem_limit_bytes=_VMEM_BUDGET),
    )(xf, xb, ln['gamma'], ln['beta'], attn['wa'], attn['ba'], attn['wc'], attn['bc'],
      fc['w'], fc['b'])


# ---------------------------------------------------------------------------
# Full forward
# ---------------------------------------------------------------------------

def hier_att_net(params, input_ids, output_attentions=False):
    b, s, w = input_ids.shape
    ids = input_ids.reshape(b * s, w)
    # Embedding gather + eval-mode dropout (identity) kept in plain JAX.
    emb = jnp.take(params['w2e'], ids, axis=0).astype(jnp.float32)       # (b*s, w, ed)
    # Word level (nn.GRU batch_first=False => seq axis = b*s, "batch" = w).
    wf, wb = bigru(emb, params['word_gru'])                              # 2x (b*s, w, wd)
    words_embed, words_attn = ln_attention(wf, wb, params['word_ln'],
                                           params['word_attn'])          # (b*s, 2*wd)
    words_embed = words_embed.reshape(b, s, -1)
    # Sentence level.
    sf, sb = bigru(words_embed, params['sent_gru'])                      # 2x (b, s, sd)
    logits, sents_attn = ln_attention_fc(sf, sb, params['sent_ln'],
                                         params['sent_attn'], params['fc'])
    # TODO(synk): for single-chunk/untiled cases the LN+attention could run in the
    # GRU epilogue before the output leaves VMEM (biggest relative win on v5e).
    if output_attentions:
        return logits, words_attn, sents_attn
    return logits


# ---------------------------------------------------------------------------
# Pure-JAX reference (same math, no Pallas) for correctness checking
# ---------------------------------------------------------------------------

def _gru_dir_ref(x, wih, whh, bih, bhh):
    L, N, _ = x.shape
    H = whh.shape[0]

    def step(h, xt):
        gi = xt @ wih + bih
        gh = h @ whh + bhh
        r = jax.nn.sigmoid(gi[:, :H] + gh[:, :H])
        z = jax.nn.sigmoid(gi[:, H:2 * H] + gh[:, H:2 * H])
        n = jnp.tanh(gi[:, 2 * H:] + r * gh[:, 2 * H:])
        hn = (1.0 - z) * n + z * h
        return hn, hn

    _, ys = lax.scan(step, jnp.zeros((N, H), jnp.float32), x)
    return ys


def _bigru_ref(x, p):
    yf = _gru_dir_ref(x, p['wih_f'], p['whh_f'], p['bih_f'], p['bhh_f'])
    yb = _gru_dir_ref(x[::-1], p['wih_b'], p['whh_b'], p['bih_b'], p['bhh_b'])[::-1]
    return jnp.concatenate([yf, yb], axis=-1)


def _ln_attention_ref(x, ln, attn):
    mean = x.mean(-1, keepdims=True)
    var = ((x - mean) ** 2).mean(-1, keepdims=True)
    xn = (x - mean) / jnp.sqrt(var + 1e-5) * ln['gamma'] + ln['beta']
    a = jnp.tanh(jnp.einsum('bnd,dh->bnh', xn, attn['wa']) + attn['ba'])
    s = jnp.sum(a * attn['wc'], axis=-1) + attn['bc']
    p = jax.nn.softmax(s, axis=1)
    out = jnp.einsum('bnd,bn->bd', xn, p)
    return out, p


def hier_att_net_ref(params, input_ids):
    b, s, w = input_ids.shape
    ids = input_ids.reshape(b * s, w)
    emb = jnp.take(params['w2e'], ids, axis=0).astype(jnp.float32)
    words = _bigru_ref(emb, params['word_gru'])
    words_embed, _ = _ln_attention_ref(words, params['word_ln'], params['word_attn'])
    words_embed = words_embed.reshape(b, s, words_embed.shape[-1])
    sents = _bigru_ref(words_embed, params['sent_gru'])
    sents_embed, _ = _ln_attention_ref(sents, params['sent_ln'], params['sent_attn'])
    return sents_embed @ params['fc']['w'] + params['fc']['b']


# ---------------------------------------------------------------------------
# Deterministic parameter init (synthetic; shapes follow the PyTorch __init__)
# ---------------------------------------------------------------------------

def init_params(key, vocab_len, embed_dims, word_dims, sent_dims, num_classes):
    ks = iter(jax.random.split(key, 48))

    def u(shape, scale=0.2):
        return jax.random.uniform(next(ks), shape, jnp.float32, -scale, scale)

    def gru(din, h):
        # Weights stored pre-transposed ((Din, 3H) / (H, 3H)); biases as (1, 3H).
        return dict(wih_f=u((din, 3 * h)), whh_f=u((h, 3 * h)),
                    bih_f=u((1, 3 * h)), bhh_f=u((1, 3 * h)),
                    wih_b=u((din, 3 * h)), whh_b=u((h, 3 * h)),
                    bih_b=u((1, 3 * h)), bhh_b=u((1, 3 * h)))

    def attn(d, h):
        return dict(wa=u((d, h)), ba=u((1, h)), wc=u((1, h)), bc=u((1, 1)))

    def ln(d):
        return dict(gamma=jnp.ones((1, d), jnp.float32),
                    beta=jnp.zeros((1, d), jnp.float32))

    return dict(
        w2e=u((vocab_len, embed_dims), 0.5),
        word_gru=gru(embed_dims, word_dims),
        word_ln=ln(2 * word_dims),
        word_attn=attn(2 * word_dims, word_dims),
        sent_gru=gru(2 * word_dims, sent_dims),
        sent_ln=ln(2 * sent_dims),
        sent_attn=attn(2 * sent_dims, sent_dims),
        fc=dict(w=u((2 * sent_dims, num_classes)), b=u((1, num_classes))),
    )


# ---------------------------------------------------------------------------

if __name__ == "__main__":
    b, s, w = 2, 4, 8
    vocab_len, embed_dims = 64, 32
    word_dims, sent_dims, num_classes = 16, 16, 2

    key = jax.random.PRNGKey(0)
    pkey, dkey, xkey = jax.random.split(key, 3)
    params = init_params(pkey, vocab_len, embed_dims, word_dims, sent_dims, num_classes)
    input_ids = jax.random.randint(dkey, (b, s, w), 0, vocab_len, dtype=jnp.int32)

    # (1) Standalone multi-chunk GRU check: exercises the time-chunked grid, the
    #     cross-chunk hidden-state carry and the reversed backward index maps.
    xt = jax.random.uniform(xkey, (16, 8, embed_dims), jnp.float32, -1.0, 1.0)
    gf, gb = bigru(xt, params['word_gru'], max_chunk=4)
    gf, gb = jax.block_until_ready((gf, gb))
    gru_ref = _bigru_ref(xt, params['word_gru'])
    assert jnp.allclose(jnp.concatenate([gf, gb], axis=-1), gru_ref,
                        atol=1e-4, rtol=1e-4)

    # (2) Full forward pass.
    out = hier_att_net(params, input_ids)
    out = jax.block_until_ready(out)
    ref = hier_att_net_ref(params, input_ids)
    assert out.shape == (b, num_classes), out.shape
    # 1e-3 tolerance: softmax normalisation uses the EUP approx reciprocal
    # (+ one Newton step) inside the attention kernels.
    assert jnp.allclose(out, ref, atol=1e-3, rtol=1e-3), (out, ref)

    print("KERNEL_OK")
</pallas_src>

<mosaic_0001>
module attributes {stable_mosaic.version = 11 : i64} {
  func.func @bigru_kernel(%arg0: i32, %arg1: i32, %arg2: memref<4x8x32xf32, #tpu.memory_space<vmem>>, %arg3: memref<4x8x32xf32, #tpu.memory_space<vmem>>, %arg4: memref<32x48xf32, #tpu.memory_space<vmem>>, %arg5: memref<32x48xf32, #tpu.memory_space<vmem>>, %arg6: memref<1x48xf32, #tpu.memory_space<vmem>>, %arg7: memref<1x48xf32, #tpu.memory_space<vmem>>, %arg8: memref<32x96xf32, #tpu.memory_space<vmem>>, %arg9: memref<1x32xf32, #tpu.memory_space<vmem>>, %arg10: memref<4x8x16xf32, #tpu.memory_space<vmem>>, %arg11: memref<4x8x16xf32, #tpu.memory_space<vmem>>, %arg12: memref<8x32xf32, #tpu.memory_space<vmem>>, %arg13: memref<4x8x48xf32, #tpu.memory_space<vmem>>, %arg14: memref<4x8x48xf32, #tpu.memory_space<vmem>>) attributes {dimension_semantics = [#tpu.dimension_semantics<parallel>, #tpu.dimension_semantics<arbitrary>], iteration_bounds = array<i64: 1, 4>, scalar_prefetch = 0 : i64, scratch_operands = 3 : i64, tpu.core_type = #tpu.core_type<tc>, window_params = [{transform_indices = @transform_0, window_bounds = array<i64: 4, 8, 32>}, {transform_indices = @transform_1, window_bounds = array<i64: 4, 8, 32>}, {pipeline_mode = #tpu.pipeline_mode<synchronous>, transform_indices = @transform_2, window_bounds = array<i64: 32, 48>}, {pipeline_mode = #tpu.pipeline_mode<synchronous>, transform_indices = @transform_3, window_bounds = array<i64: 32, 48>}, {pipeline_mode = #tpu.pipeline_mode<synchronous>, transform_indices = @transform_4, window_bounds = array<i64: 1, 48>}, {pipeline_mode = #tpu.pipeline_mode<synchronous>, transform_indices = @transform_5, window_bounds = array<i64: 1, 48>}, {pipeline_mode = #tpu.pipeline_mode<synchronous>, transform_indices = @transform_6, window_bounds = array<i64: 32, 96>}, {pipeline_mode = #tpu.pipeline_mode<synchronous>, transform_indices = @transform_7, window_bounds = array<i64: 1, 32>}, {transform_indices = @transform_8, window_bounds = array<i64: 4, 8, 16>}, {transform_indices = @transform_9, window_bounds = array<i64: 4, 8, 16>}]} {
    %c0_i32 = arith.constant 0 : i32
    %0 = arith.cmpi eq, %arg1, %c0_i32 : i32
    %1 = arith.extui %0 : i1 to i32
    %c0_i32_0 = arith.constant 0 : i32
    %2 = arith.cmpi ne, %1, %c0_i32_0 : i32
    scf.if %2 {
      %cst_99 = arith.constant 0.000000e+00 : f32
      %338 = vector.broadcast %cst_99 : f32 to vector<8x32xf32>
      %c0_100 = arith.constant 0 : index
      %c0_101 = arith.constant 0 : index
      %339 = vector.load %arg12[%c0_100, %c0_101] : memref<8x32xf32, #tpu.memory_space<vmem>>, vector<8x32xf32>
      tpu.vector_store %arg12[%c0_100, %c0_101], %338 {strides = array<i32>} : memref<8x32xf32, #tpu.memory_space<vmem>>, vector<8x32xf32>,
    } else {
    }
    %c0 = arith.constant 0 : index
    %c0_1 = arith.constant 0 : index
    %c0_2 = arith.constant 0 : index
    %3 = vector.load %arg2[%c0, %c0_1, %c0_2] : memref<4x8x32xf32, #tpu.memory_space<vmem>>, vector<4x8x32xf32>
    %4 = vector.shape_cast %3 : vector<4x8x32xf32> to vector<32x32xf32>
    %c0_3 = arith.constant 0 : index
    %c0_4 = arith.constant 0 : index
    %5 = vector.load %arg4[%c0_3, %c0_4] : memref<32x48xf32, #tpu.memory_space<vmem>>, vector<32x48xf32>
    %cst = arith.constant dense<0.000000e+00> : vector<32x48xf32>
    %6 = tpu.matmul %4, %5, %cst {dimension_numbers = #tpu.dot_dimension_numbers<[1], [0], [0], [1], [0, 0, 1, 1], [], []>} : vector<32x32xf32>, vector<32x48xf32>, vector<32x48xf32> -> vector<32x48xf32>
    %c0_5 = arith.constant 0 : index
    %c0_6 = arith.constant 0 : index
    %7 = vector.load %arg6[%c0_5, %c0_6] : memref<1x48xf32, #tpu.memory_space<vmem>>, vector<1x48xf32>
    %8 = vector.broadcast %7 : vector<1x48xf32> to vector<32x48xf32>
    %9 = arith.addf %6, %8 : vector<32x48xf32>
    %10 = vector.shape_cast %9 : vector<32x48xf32> to vector<4x8x48xf32>
    %c0_7 = arith.constant 0 : index
    %c0_8 = arith.constant 0 : index
    %c0_9 = arith.constant 0 : index
    %11 = vector.load %arg13[%c0_7, %c0_8, %c0_9] : memref<4x8x48xf32, #tpu.memory_space<vmem>>, vector<4x8x48xf32>
    tpu.vector_store %arg13[%c0_7, %c0_8, %c0_9], %10 {strides = array<i32>} : memref<4x8x48xf32, #tpu.memory_space<vmem>>, vector<4x8x48xf32>,
    %c0_10 = arith.constant 0 : index
    %c0_11 = arith.constant 0 : index
    %c0_12 = arith.constant 0 : index
    %12 = vector.load %arg3[%c0_10, %c0_11, %c0_12] : memref<4x8x32xf32, #tpu.memory_space<vmem>>, vector<4x8x32xf32>
    %13 = vector.shape_cast %12 : vector<4x8x32xf32> to vector<32x32xf32>
    %c0_13 = arith.constant 0 : index
    %c0_14 = arith.constant 0 : index
    %14 = vector.load %arg5[%c0_13, %c0_14] : memref<32x48xf32, #tpu.memory_space<vmem>>, vector<32x48xf32>
    %cst_15 = arith.constant dense<0.000000e+00> : vector<32x48xf32>
    %15 = tpu.matmul %13, %14, %cst_15 {dimension_numbers = #tpu.dot_dimension_numbers<[1], [0], [0], [1], [0, 0, 1, 1], [], []>} : vector<32x32xf32>, vector<32x48xf32>, vector<32x48xf32> -> vector<32x48xf32>
    %c0_16 = arith.constant 0 : index
    %c0_17 = arith.constant 0 : index
    %16 = vector.load %arg7[%c0_16, %c0_17] : memref<1x48xf32, #tpu.memory_space<vmem>>, vector<1x48xf32>
    %17 = vector.broadcast %16 : vector<1x48xf32> to vector<32x48xf32>
    %18 = arith.addf %15, %17 : vector<32x48xf32>
    %19 = vector.shape_cast %18 : vector<32x48xf32> to vector<4x8x48xf32>
    %c0_18 = arith.constant 0 : index
    %c0_19 = arith.constant 0 : index
    %c0_20 = arith.constant 0 : index
    %20 = vector.load %arg14[%c0_18, %c0_19, %c0_20] : memref<4x8x48xf32, #tpu.memory_space<vmem>>, vector<4x8x48xf32>
    tpu.vector_store %arg14[%c0_18, %c0_19, %c0_20], %19 {strides = array<i32>} : memref<4x8x48xf32, #tpu.memory_space<vmem>>, vector<4x8x48xf32>,
    %c0_21 = arith.constant 0 : index
    %c0_22 = arith.constant 0 : index
    %21 = vector.load %arg8[%c0_21, %c0_22] : memref<32x96xf32, #tpu.memory_space<vmem>>, vector<32x96xf32>
    %c0_23 = arith.constant 0 : index
    %c0_24 = arith.constant 0 : index
    %22 = vector.load %arg9[%c0_23, %c0_24] : memref<1x32xf32, #tpu.memory_space<vmem>>, vector<1x16xf32>
    %c0_25 = arith.constant 0 : index
    %c16 = arith.constant 16 : index
    %23 = vector.load %arg9[%c0_25, %c16] : memref<1x32xf32, #tpu.memory_space<vmem>>, vector<1x16xf32>
    %c0_26 = arith.constant 0 : index
    %c0_27 = arith.constant 0 : index
    %24 = vector.load %arg12[%c0_26, %c0_27] : memref<8x32xf32, #tpu.memory_space<vmem>>, vector<8x32xf32>
    %c0_i32_28 = arith.constant 0 : i32
    %cst_29 = arith.constant dense<0.000000e+00> : vector<8x96xf32>
    %25 = tpu.matmul %24, %21, %cst_29 {dimension_numbers = #tpu.dot_dimension_numbers<[1], [0], [0], [1], [0, 0, 1, 1], [], []>} : vector<8x32xf32>, vector<32x96xf32>, vector<8x96xf32> -> vector<8x96xf32>
    %26 = vector.extract_strided_slice %25 {offsets = [0, 0], sizes = [8, 48], strides = [1, 1]} : vector<8x96xf32> to vector<8x48xf32>
    %27 = vector.extract_strided_slice %25 {offsets = [0, 48], sizes = [8, 48], strides = [1, 1]} : vector<8x96xf32> to vector<8x48xf32>
    %28 = arith.index_cast %c0_i32_28 : i32 to index
    %c0_30 = arith.constant 0 : index
    %c0_31 = arith.constant 0 : index
    %29 = vector.load %arg13[%28, %c0_30, %c0_31] : memref<4x8x48xf32, #tpu.memory_space<vmem>>, vector<1x8x48xf32>
    %30 = vector.shape_cast %29 : vector<1x8x48xf32> to vector<8x48xf32>
    %31 = vector.extract_strided_slice %24 {offsets = [0, 0], sizes = [8, 16], strides = [1, 1]} : vector<8x32xf32> to vector<8x16xf32>
    %32 = vector.extract_strided_slice %30 {offsets = [0, 0], sizes = [8, 16], strides = [1, 1]} : vector<8x48xf32> to vector<8x16xf32>
    %33 = vector.extract_strided_slice %26 {offsets = [0, 0], sizes = [8, 16], strides = [1, 1]} : vector<8x48xf32> to vector<8x16xf32>
    %34 = arith.addf %32, %33 : vector<8x16xf32>
    %35 = arith.negf %34 : vector<8x16xf32>
    %36 = math.exp %35 : vector<8x16xf32>
    %cst_32 = arith.constant 1.000000e+00 : f32
    %37 = vector.broadcast %cst_32 : f32 to vector<8x16xf32>
    %38 = arith.addf %37, %36 : vector<8x16xf32>
    %39 = arith.divf %37, %38 : vector<8x16xf32>
    %40 = vector.extract_strided_slice %30 {offsets = [0, 16], sizes = [8, 16], strides = [1, 1]} : vector<8x48xf32> to vector<8x16xf32>
    %41 = vector.extract_strided_slice %26 {offsets = [0, 16], sizes = [8, 16], strides = [1, 1]} : vector<8x48xf32> to vector<8x16xf32>
    %42 = arith.addf %40, %41 : vector<8x16xf32>
    %43 = arith.negf %42 : vector<8x16xf32>
    %44 = math.exp %43 : vector<8x16xf32>
    %cst_33 = arith.constant 1.000000e+00 : f32
    %45 = vector.broadcast %cst_33 : f32 to vector<8x16xf32>
    %46 = arith.addf %45, %44 : vector<8x16xf32>
    %47 = arith.divf %45, %46 : vector<8x16xf32>
    %48 = vector.extract_strided_slice %30 {offsets = [0, 32], sizes = [8, 16], strides = [1, 1]} : vector<8x48xf32> to vector<8x16xf32>
    %49 = vector.extract_strided_slice %26 {offsets = [0, 32], sizes = [8, 16], strides = [1, 1]} : vector<8x48xf32> to vector<8x16xf32>
    %50 = vector.broadcast %22 : vector<1x16xf32> to vector<8x16xf32>
    %51 = arith.addf %49, %50 : vector<8x16xf32>
    %52 = arith.mulf %39, %51 : vector<8x16xf32>
    %53 = arith.addf %48, %52 : vector<8x16xf32>
    %54 = math.tanh %53 : vector<8x16xf32>
    %cst_34 = arith.constant 1.000000e+00 : f32
    %55 = vector.broadcast %cst_34 : f32 to vector<8x16xf32>
    %56 = arith.subf %55, %47 : vector<8x16xf32>
    %57 = arith.mulf %56, %54 : vector<8x16xf32>
    %58 = arith.mulf %47, %31 : vector<8x16xf32>
    %59 = arith.addf %57, %58 : vector<8x16xf32>
    %c3_i32 = arith.constant 3 : i32
    %60 = arith.subi %c3_i32, %c0_i32_28 : i32
    %61 = arith.index_cast %60 : i32 to index
    %c0_35 = arith.constant 0 : index
    %c0_36 = arith.constant 0 : index
    %62 = vector.load %arg14[%61, %c0_35, %c0_36] : memref<4x8x48xf32, #tpu.memory_space<vmem>>, vector<1x8x48xf32>
    %63 = vector.shape_cast %62 : vector<1x8x48xf32> to vector<8x48xf32>
    %64 = vector.extract_strided_slice %24 {offsets = [0, 16], sizes = [8, 16], strides = [1, 1]} : vector<8x32xf32> to vector<8x16xf32>
    %65 = vector.extract_strided_slice %63 {offsets = [0, 0], sizes = [8, 16], strides = [1, 1]} : vector<8x48xf32> to vector<8x16xf32>
    %66 = vector.extract_strided_slice %27 {offsets = [0, 0], sizes = [8, 16], strides = [1, 1]} : vector<8x48xf32> to vector<8x16xf32>
    %67 = arith.addf %65, %66 : vector<8x16xf32>
    %68 = arith.negf %67 : vector<8x16xf32>
    %69 = math.exp %68 : vector<8x16xf32>
    %cst_37 = arith.constant 1.000000e+00 : f32
    %70 = vector.broadcast %cst_37 : f32 to vector<8x16xf32>
    %71 = arith.addf %70, %69 : vector<8x16xf32>
    %72 = arith.divf %70, %71 : vector<8x16xf32>
    %73 = vector.extract_strided_slice %63 {offsets = [0, 16], sizes = [8, 16], strides = [1, 1]} : vector<8x48xf32> to vector<8x16xf32>
    %74 = vector.extract_strided_slice %27 {offsets = [0, 16], sizes = [8, 16], strides = [1, 1]} : vector<8x48xf32> to vector<8x16xf32>
    %75 = arith.addf %73, %74 : vector<8x16xf32>
    %76 = arith.negf %75 : vector<8x16xf32>
    %77 = math.exp %76 : vector<8x16xf32>
    %cst_38 = arith.constant 1.000000e+00 : f32
    %78 = vector.broadcast %cst_38 : f32 to vector<8x16xf32>
    %79 = arith.addf %78, %77 : vector<8x16xf32>
    %80 = arith.divf %78, %79 : vector<8x16xf32>
    %81 = vector.extract_strided_slice %63 {offsets = [0, 32], sizes = [8, 16], strides = [1, 1]} : vector<8x48xf32> to vector<8x16xf32>
    %82 = vector.extract_strided_slice %27 {offsets = [0, 32], sizes = [8, 16], strides = [1, 1]} : vector<8x48xf32> to vector<8x16xf32>
    %83 = vector.broadcast %23 : vector<1x16xf32> to vector<8x16xf32>
    %84 = arith.addf %82, %83 : vector<8x16xf32>
    %85 = arith.mulf %72, %84 : vector<8x16xf32>
    %86 = arith.addf %81, %85 : vector<8x16xf32>
    %87 = math.tanh %86 : vector<8x16xf32>
    %cst_39 = arith.constant 1.000000e+00 : f32
    %88 = vector.broadcast %cst_39 : f32 to vector<8x16xf32>
    %89 = arith.subf %88, %80 : vector<8x16xf32>
    %90 = arith.mulf %89, %87 : vector<8x16xf32>
    %91 = arith.mulf %80, %64 : vector<8x16xf32>
    %92 = arith.addf %90, %91 : vector<8x16xf32>
    %93 = arith.index_cast %c0_i32_28 : i32 to index
    %c0_40 = arith.constant 0 : index
    %c0_41 = arith.constant 0 : index
    %94 = vector.load %arg10[%93, %c0_40, %c0_41] : memref<4x8x16xf32, #tpu.memory_space<vmem>>, vector<1x8x16xf32>
    %95 = vector.shape_cast %94 : vector<1x8x16xf32> to vector<8x16xf32>
    %96 = vector.shape_cast %59 : vector<8x16xf32> to vector<1x8x16xf32>
    tpu.vector_store %arg10[%93, %c0_40, %c0_41], %96 {strides = array<i32>} : memref<4x8x16xf32, #tpu.memory_space<vmem>>, vector<1x8x16xf32>,
    %c3_i32_42 = arith.constant 3 : i32
    %97 = arith.subi %c3_i32_42, %c0_i32_28 : i32
    %98 = arith.index_cast %97 : i32 to index
    %c0_43 = arith.constant 0 : index
    %c0_44 = arith.constant 0 : index
    %99 = vector.load %arg11[%98, %c0_43, %c0_44] : memref<4x8x16xf32, #tpu.memory_space<vmem>>, vector<1x8x16xf32>
    %100 = vector.shape_cast %99 : vector<1x8x16xf32> to vector<8x16xf32>
    %101 = vector.shape_cast %92 : vector<8x16xf32> to vector<1x8x16xf32>
    tpu.vector_store %arg11[%98, %c0_43, %c0_44], %101 {strides = array<i32>} : memref<4x8x16xf32, #tpu.memory_space<vmem>>, vector<1x8x16xf32>,
    %102 = tpu.concatenate %59, %92 in 1 : vector<8x16xf32>, vector<8x16xf32> -> vector<8x32xf32>
    %c1_i32 = arith.constant 1 : i32
    %cst_45 = arith.constant dense<0.000000e+00> : vector<8x96xf32>
    %103 = tpu.matmul %102, %21, %cst_45 {dimension_numbers = #tpu.dot_dimension_numbers<[1], [0], [0], [1], [0, 0, 1, 1], [], []>} : vector<8x32xf32>, vector<32x96xf32>, vector<8x96xf32> -> vector<8x96xf32>
    %104 = vector.extract_strided_slice %103 {offsets = [0, 0], sizes = [8, 48], strides = [1, 1]} : vector<8x96xf32> to vector<8x48xf32>
    %105 = vector.extract_strided_slice %103 {offsets = [0, 48], sizes = [8, 48], strides = [1, 1]} : vector<8x96xf32> to vector<8x48xf32>
    %106 = arith.index_cast %c1_i32 : i32 to index
    %c0_46 = arith.constant 0 : index
    %c0_47 = arith.constant 0 : index
    %107 = vector.load %arg13[%106, %c0_46, %c0_47] : memref<4x8x48xf32, #tpu.memory_space<vmem>>, vector<1x8x48xf32>
    %108 = vector.shape_cast %107 : vector<1x8x48xf32> to vector<8x48xf32>
    %109 = vector.extract_strided_slice %102 {offsets = [0, 0], sizes = [8, 16], strides = [1, 1]} : vector<8x32xf32> to vector<8x16xf32>
    %110 = vector.extract_strided_slice %108 {offsets = [0, 0], sizes = [8, 16], strides = [1, 1]} : vector<8x48xf32> to vector<8x16xf32>
    %111 = vector.extract_strided_slice %104 {offsets = [0, 0], sizes = [8, 16], strides = [1, 1]} : vector<8x48xf32> to vector<8x16xf32>
    %112 = arith.addf %110, %111 : vector<8x16xf32>
    %113 = arith.negf %112 : vector<8x16xf32>
    %114 = math.exp %113 : vector<8x16xf32>
    %cst_48 = arith.constant 1.000000e+00 : f32
    %115 = vector.broadcast %cst_48 : f32 to vector<8x16xf32>
    %116 = arith.addf %115, %114 : vector<8x16xf32>
    %117 = arith.divf %115, %116 : vector<8x16xf32>
    %118 = vector.extract_strided_slice %108 {offsets = [0, 16], sizes = [8, 16], strides = [1, 1]} : vector<8x48xf32> to vector<8x16xf32>
    %119 = vector.extract_strided_slice %104 {offsets = [0, 16], sizes = [8, 16], strides = [1, 1]} : vector<8x48xf32> to vector<8x16xf32>
    %120 = arith.addf %118, %119 : vector<8x16xf32>
    %121 = arith.negf %120 : vector<8x16xf32>
    %122 = math.exp %121 : vector<8x16xf32>
    %cst_49 = arith.constant 1.000000e+00 : f32
    %123 = vector.broadcast %cst_49 : f32 to vector<8x16xf32>
    %124 = arith.addf %123, %122 : vector<8x16xf32>
    %125 = arith.divf %123, %124 : vector<8x16xf32>
    %126 = vector.extract_strided_slice %108 {offsets = [0, 32], sizes = [8, 16], strides = [1, 1]} : vector<8x48xf32> to vector<8x16xf32>
    %127 = vector.extract_strided_slice %104 {offsets = [0, 32], sizes = [8, 16], strides = [1, 1]} : vector<8x48xf32> to vector<8x16xf32>
    %128 = vector.broadcast %22 : vector<1x16xf32> to vector<8x16xf32>
    %129 = arith.addf %127, %128 : vector<8x16xf32>
    %130 = arith.mulf %117, %129 : vector<8x16xf32>
    %131 = arith.addf %126, %130 : vector<8x16xf32>
    %132 = math.tanh %131 : vector<8x16xf32>
    %cst_50 = arith.constant 1.000000e+00 : f32
    %133 = vector.broadcast %cst_50 : f32 to vector<8x16xf32>
    %134 = arith.subf %133, %125 : vector<8x16xf32>
    %135 = arith.mulf %134, %132 : vector<8x16xf32>
    %136 = arith.mulf %125, %109 : vector<8x16xf32>
    %137 = arith.addf %135, %136 : vector<8x16xf32>
    %c3_i32_51 = arith.constant 3 : i32
    %138 = arith.subi %c3_i32_51, %c1_i32 : i32
    %139 = arith.index_cast %138 : i32 to index
    %c0_52 = arith.constant 0 : index
    %c0_53 = arith.constant 0 : index
    %140 = vector.load %arg14[%139, %c0_52, %c0_53] : memref<4x8x48xf32, #tpu.memory_space<vmem>>, vector<1x8x48xf32>
    %141 = vector.shape_cast %140 : vector<1x8x48xf32> to vector<8x48xf32>
    %142 = vector.extract_strided_slice %102 {offsets = [0, 16], sizes = [8, 16], strides = [1, 1]} : vector<8x32xf32> to vector<8x16xf32>
    %143 = vector.extract_strided_slice %141 {offsets = [0, 0], sizes = [8, 16], strides = [1, 1]} : vector<8x48xf32> to vector<8x16xf32>
    %144 = vector.extract_strided_slice %105 {offsets = [0, 0], sizes = [8, 16], strides = [1, 1]} : vector<8x48xf32> to vector<8x16xf32>
    %145 = arith.addf %143, %144 : vector<8x16xf32>
    %146 = arith.negf %145 : vector<8x16xf32>
    %147 = math.exp %146 : vector<8x16xf32>
    %cst_54 = arith.constant 1.000000e+00 : f32
    %148 = vector.broadcast %cst_54 : f32 to vector<8x16xf32>
    %149 = arith.addf %148, %147 : vector<8x16xf32>
    %150 = arith.divf %148, %149 : vector<8x16xf32>
    %151 = vector.extract_strided_slice %141 {offsets = [0, 16], sizes = [8, 16], strides = [1, 1]} : vector<8x48xf32> to vector<8x16xf32>
    %152 = vector.extract_strided_slice %105 {offsets = [0, 16], sizes = [8, 16], strides = [1, 1]} : vector<8x48xf32> to vector<8x16xf32>
    %153 = arith.addf %151, %152 : vector<8x16xf32>
    %154 = arith.negf %153 : vector<8x16xf32>
    %155 = math.exp %154 : vector<8x16xf32>
    %cst_55 = arith.constant 1.000000e+00 : f32
    %156 = vector.broadcast %cst_55 : f32 to vector<8x16xf32>
    %157 = arith.addf %156, %155 : vector<8x16xf32>
    %158 = arith.divf %156, %157 : vector<8x16xf32>
    %159 = vector.extract_strided_slice %141 {offsets = [0, 32], sizes = [8, 16], strides = [1, 1]} : vector<8x48xf32> to vector<8x16xf32>
    %160 = vector.extract_strided_slice %105 {offsets = [0, 32], sizes = [8, 16], strides = [1, 1]} : vector<8x48xf32> to vector<8x16xf32>
    %161 = vector.broadcast %23 : vector<1x16xf32> to vector<8x16xf32>
    %162 = arith.addf %160, %161 : vector<8x16xf32>
    %163 = arith.mulf %150, %162 : vector<8x16xf32>
    %164 = arith.addf %159, %163 : vector<8x16xf32>
    %165 = math.tanh %164 : vector<8x16xf32>
    %cst_56 = arith.constant 1.000000e+00 : f32
    %166 = vector.broadcast %cst_56 : f32 to vector<8x16xf32>
    %167 = arith.subf %166, %158 : vector<8x16xf32>
    %168 = arith.mulf %167, %165 : vector<8x16xf32>
    %169 = arith.mulf %158, %142 : vector<8x16xf32>
    %170 = arith.addf %168, %169 : vector<8x16xf32>
    %171 = arith.index_cast %c1_i32 : i32 to index
    %c0_57 = arith.constant 0 : index
    %c0_58 = arith.constant 0 : index
    %172 = vector.load %arg10[%171, %c0_57, %c0_58] : memref<4x8x16xf32, #tpu.memory_space<vmem>>, vector<1x8x16xf32>
    %173 = vector.shape_cast %172 : vector<1x8x16xf32> to vector<8x16xf32>
    %174 = vector.shape_cast %137 : vector<8x16xf32> to vector<1x8x16xf32>
    tpu.vector_store %arg10[%171, %c0_57, %c0_58], %174 {strides = array<i32>} : memref<4x8x16xf32, #tpu.memory_space<vmem>>, vector<1x8x16xf32>,
    %c3_i32_59 = arith.constant 3 : i32
    %175 = arith.subi %c3_i32_59, %c1_i32 : i32
    %176 = arith.index_cast %175 : i32 to index
    %c0_60 = arith.constant 0 : index
    %c0_61 = arith.constant 0 : index
    %177 = vector.load %arg11[%176, %c0_60, %c0_61] : memref<4x8x16xf32, #tpu.memory_space<vmem>>, vector<1x8x16xf32>
    %178 = vector.shape_cast %177 : vector<1x8x16xf32> to vector<8x16xf32>
    %179 = vector.shape_cast %170 : vector<8x16xf32> to vector<1x8x16xf32>
    tpu.vector_store %arg11[%176, %c0_60, %c0_61], %179 {strides = array<i32>} : memref<4x8x16xf32, #tpu.memory_space<vmem>>, vector<1x8x16xf32>,
    %180 = tpu.concatenate %137, %170 in 1 : vector<8x16xf32>, vector<8x16xf32> -> vector<8x32xf32>
    %c2_i32 = arith.constant 2 : i32
    %cst_62 = arith.constant dense<0.000000e+00> : vector<8x96xf32>
    %181 = tpu.matmul %180, %21, %cst_62 {dimension_numbers = #tpu.dot_dimension_numbers<[1], [0], [0], [1], [0, 0, 1, 1], [], []>} : vector<8x32xf32>, vector<32x96xf32>, vector<8x96xf32> -> vector<8x96xf32>
    %182 = vector.extract_strided_slice %181 {offsets = [0, 0], sizes = [8, 48], strides = [1, 1]} : vector<8x96xf32> to vector<8x48xf32>
    %183 = vector.extract_strided_slice %181 {offsets = [0, 48], sizes = [8, 48], strides = [1, 1]} : vector<8x96xf32> to vector<8x48xf32>
    %184 = arith.index_cast %c2_i32 : i32 to index
    %c0_63 = arith.constant 0 : index
    %c0_64 = arith.constant 0 : index
    %185 = vector.load %arg13[%184, %c0_63, %c0_64] : memref<4x8x48xf32, #tpu.memory_space<vmem>>, vector<1x8x48xf32>
    %186 = vector.shape_cast %185 : vector<1x8x48xf32> to vector<8x48xf32>
    %187 = vector.extract_strided_slice %180 {offsets = [0, 0], sizes = [8, 16], strides = [1, 1]} : vector<8x32xf32> to vector<8x16xf32>
    %188 = vector.extract_strided_slice %186 {offsets = [0, 0], sizes = [8, 16], strides = [1, 1]} : vector<8x48xf32> to vector<8x16xf32>
    %189 = vector.extract_strided_slice %182 {offsets = [0, 0], sizes = [8, 16], strides = [1, 1]} : vector<8x48xf32> to vector<8x16xf32>
    %190 = arith.addf %188, %189 : vector<8x16xf32>
    %191 = arith.negf %190 : vector<8x16xf32>
    %192 = math.exp %191 : vector<8x16xf32>
    %cst_65 = arith.constant 1.000000e+00 : f32
    %193 = vector.broadcast %cst_65 : f32 to vector<8x16xf32>
    %194 = arith.addf %193, %192 : vector<8x16xf32>
    %195 = arith.divf %193, %194 : vector<8x16xf32>
    %196 = vector.extract_strided_slice %186 {offsets = [0, 16], sizes = [8, 16], strides = [1, 1]} : vector<8x48xf32> to vector<8x16xf32>
    %197 = vector.extract_strided_slice %182 {offsets = [0, 16], sizes = [8, 16], strides = [1, 1]} : vector<8x48xf32> to vector<8x16xf32>
    %198 = arith.addf %196, %197 : vector<8x16xf32>
    %199 = arith.negf %198 : vector<8x16xf32>
    %200 = math.exp %199 : vector<8x16xf32>
    %cst_66 = arith.constant 1.000000e+00 : f32
    %201 = vector.broadcast %cst_66 : f32 to vector<8x16xf32>
    %202 = arith.addf %201, %200 : vector<8x16xf32>
    %203 = arith.divf %201, %202 : vector<8x16xf32>
    %204 = vector.extract_strided_slice %186 {offsets = [0, 32], sizes = [8, 16], strides = [1, 1]} : vector<8x48xf32> to vector<8x16xf32>
    %205 = vector.extract_strided_slice %182 {offsets = [0, 32], sizes = [8, 16], strides = [1, 1]} : vector<8x48xf32> to vector<8x16xf32>
    %206 = vector.broadcast %22 : vector<1x16xf32> to vector<8x16xf32>
    %207 = arith.addf %205, %206 : vector<8x16xf32>
    %208 = arith.mulf %195, %207 : vector<8x16xf32>
    %209 = arith.addf %204, %208 : vector<8x16xf32>
    %210 = math.tanh %209 : vector<8x16xf32>
    %cst_67 = arith.constant 1.000000e+00 : f32
    %211 = vector.broadcast %cst_67 : f32 to vector<8x16xf32>
    %212 = arith.subf %211, %203 : vector<8x16xf32>
    %213 = arith.mulf %212, %210 : vector<8x16xf32>
    %214 = arith.mulf %203, %187 : vector<8x16xf32>
    %215 = arith.addf %213, %214 : vector<8x16xf32>
    %c3_i32_68 = arith.constant 3 : i32
    %216 = arith.subi %c3_i32_68, %c2_i32 : i32
    %217 = arith.index_cast %216 : i32 to index
    %c0_69 = arith.constant 0 : index
    %c0_70 = arith.constant 0 : index
    %218 = vector.load %arg14[%217, %c0_69, %c0_70] : memref<4x8x48xf32, #tpu.memory_space<vmem>>, vector<1x8x48xf32>
    %219 = vector.shape_cast %218 : vector<1x8x48xf32> to vector<8x48xf32>
    %220 = vector.extract_strided_slice %180 {offsets = [0, 16], sizes = [8, 16], strides = [1, 1]} : vector<8x32xf32> to vector<8x16xf32>
    %221 = vector.extract_strided_slice %219 {offsets = [0, 0], sizes = [8, 16], strides = [1, 1]} : vector<8x48xf32> to vector<8x16xf32>
    %222 = vector.extract_strided_slice %183 {offsets = [0, 0], sizes = [8, 16], strides = [1, 1]} : vector<8x48xf32> to vector<8x16xf32>
    %223 = arith.addf %221, %222 : vector<8x16xf32>
    %224 = arith.negf %223 : vector<8x16xf32>
    %225 = math.exp %224 : vector<8x16xf32>
    %cst_71 = arith.constant 1.000000e+00 : f32
    %226 = vector.broadcast %cst_71 : f32 to vector<8x16xf32>
    %227 = arith.addf %226, %225 : vector<8x16xf32>
    %228 = arith.divf %226, %227 : vector<8x16xf32>
    %229 = vector.extract_strided_slice %219 {offsets = [0, 16], sizes = [8, 16], strides = [1, 1]} : vector<8x48xf32> to vector<8x16xf32>
    %230 = vector.extract_strided_slice %183 {offsets = [0, 16], sizes = [8, 16], strides = [1, 1]} : vector<8x48xf32> to vector<8x16xf32>
    %231 = arith.addf %229, %230 : vector<8x16xf32>
    %232 = arith.negf %231 : vector<8x16xf32>
    %233 = math.exp %232 : vector<8x16xf32>
    %cst_72 = arith.constant 1.000000e+00 : f32
    %234 = vector.broadcast %cst_72 : f32 to vector<8x16xf32>
    %235 = arith.addf %234, %233 : vector<8x16xf32>
    %236 = arith.divf %234, %235 : vector<8x16xf32>
    %237 = vector.extract_strided_slice %219 {offsets = [0, 32], sizes = [8, 16], strides = [1, 1]} : vector<8x48xf32> to vector<8x16xf32>
    %238 = vector.extract_strided_slice %183 {offsets = [0, 32], sizes = [8, 16], strides = [1, 1]} : vector<8x48xf32> to vector<8x16xf32>
    %239 = vector.broadcast %23 : vector<1x16xf32> to vector<8x16xf32>
    %240 = arith.addf %238, %239 : vector<8x16xf32>
    %241 = arith.mulf %228, %240 : vector<8x16xf32>
    %242 = arith.addf %237, %241 : vector<8x16xf32>
    %243 = math.tanh %242 : vector<8x16xf32>
    %cst_73 = arith.constant 1.000000e+00 : f32
    %244 = vector.broadcast %cst_73 : f32 to vector<8x16xf32>
    %245 = arith.subf %244, %236 : vector<8x16xf32>
    %246 = arith.mulf %245, %243 : vector<8x16xf32>
    %247 = arith.mulf %236, %220 : vector<8x16xf32>
    %248 = arith.addf %246, %247 : vector<8x16xf32>
    %249 = arith.index_cast %c2_i32 : i32 to index
    %c0_74 = arith.constant 0 : index
    %c0_75 = arith.constant 0 : index
    %250 = vector.load %arg10[%249, %c0_74, %c0_75] : memref<4x8x16xf32, #tpu.memory_space<vmem>>, vector<1x8x16xf32>
    %251 = vector.shape_cast %250 : vector<1x8x16xf32> to vector<8x16xf32>
    %252 = vector.shape_cast %215 : vector<8x16xf32> to vector<1x8x16xf32>
    tpu.vector_store %arg10[%249, %c0_74, %c0_75], %252 {strides = array<i32>} : memref<4x8x16xf32, #tpu.memory_space<vmem>>, vector<1x8x16xf32>,
    %c3_i32_76 = arith.constant 3 : i32
    %253 = arith.subi %c3_i32_76, %c2_i32 : i32
    %254 = arith.index_cast %253 : i32 to index
    %c0_77 = arith.constant 0 : index
    %c0_78 = arith.constant 0 : index
    %255 = vector.load %arg11[%254, %c0_77, %c0_78] : memref<4x8x16xf32, #tpu.memory_space<vmem>>, vector<1x8x16xf32>
    %256 = vector.shape_cast %255 : vector<1x8x16xf32> to vector<8x16xf32>
    %257 = vector.shape_cast %248 : vector<8x16xf32> to vector<1x8x16xf32>
    tpu.vector_store %arg11[%254, %c0_77, %c0_78], %257 {strides = array<i32>} : memref<4x8x16xf32, #tpu.memory_space<vmem>>, vector<1x8x16xf32>,
    %258 = tpu.concatenate %215, %248 in 1 : vector<8x16xf32>, vector<8x16xf32> -> vector<8x32xf32>
    %c3_i32_79 = arith.constant 3 : i32
    %cst_80 = arith.constant dense<0.000000e+00> : vector<8x96xf32>
    %259 = tpu.matmul %258, %21, %cst_80 {dimension_numbers = #tpu.dot_dimension_numbers<[1], [0], [0], [1], [0, 0, 1, 1], [], []>} : vector<8x32xf32>, vector<32x96xf32>, vector<8x96xf32> -> vector<8x96xf32>
    %260 = vector.extract_strided_slice %259 {offsets = [0, 0], sizes = [8, 48], strides = [1, 1]} : vector<8x96xf32> to vector<8x48xf32>
    %261 = vector.extract_strided_slice %259 {offsets = [0, 48], sizes = [8, 48], strides = [1, 1]} : vector<8x96xf32> to vector<8x48xf32>
    %262 = arith.index_cast %c3_i32_79 : i32 to index
    %c0_81 = arith.constant 0 : index
    %c0_82 = arith.constant 0 : index
    %263 = vector.load %arg13[%262, %c0_81, %c0_82] : memref<4x8x48xf32, #tpu.memory_space<vmem>>, vector<1x8x48xf32>
    %264 = vector.shape_cast %263 : vector<1x8x48xf32> to vector<8x48xf32>
    %265 = vector.extract_strided_slice %258 {offsets = [0, 0], sizes = [8, 16], strides = [1, 1]} : vector<8x32xf32> to vector<8x16xf32>
    %266 = vector.extract_strided_slice %264 {offsets = [0, 0], sizes = [8, 16], strides = [1, 1]} : vector<8x48xf32> to vector<8x16xf32>
    %267 = vector.extract_strided_slice %260 {offsets = [0, 0], sizes = [8, 16], strides = [1, 1]} : vector<8x48xf32> to vector<8x16xf32>
    %268 = arith.addf %266, %267 : vector<8x16xf32>
    %269 = arith.negf %268 : vector<8x16xf32>
    %270 = math.exp %269 : vector<8x16xf32>
    %cst_83 = arith.constant 1.000000e+00 : f32
    %271 = vector.broadcast %cst_83 : f32 to vector<8x16xf32>
    %272 = arith.addf %271, %270 : vector<8x16xf32>
    %273 = arith.divf %271, %272 : vector<8x16xf32>
    %274 = vector.extract_strided_slice %264 {offsets = [0, 16], sizes = [8, 16], strides = [1, 1]} : vector<8x48xf32> to vector<8x16xf32>
    %275 = vector.extract_strided_slice %260 {offsets = [0, 16], sizes = [8, 16], strides = [1, 1]} : vector<8x48xf32> to vector<8x16xf32>
    %276 = arith.addf %274, %275 : vector<8x16xf32>
    %277 = arith.negf %276 : vector<8x16xf32>
    %278 = math.exp %277 : vector<8x16xf32>
    %cst_84 = arith.constant 1.000000e+00 : f32
    %279 = vector.broadcast %cst_84 : f32 to vector<8x16xf32>
    %280 = arith.addf %279, %278 : vector<8x16xf32>
    %281 = arith.divf %279, %280 : vector<8x16xf32>
    %282 = vector.extract_strided_slice %264 {offsets = [0, 32], sizes = [8, 16], strides = [1, 1]} : vector<8x48xf32> to vector<8x16xf32>
    %283 = vector.extract_strided_slice %260 {offsets = [0, 32], sizes = [8, 16], strides = [1, 1]} : vector<8x48xf32> to vector<8x16xf32>
    %284 = vector.broadcast %22 : vector<1x16xf32> to vector<8x16xf32>
    %285 = arith.addf %283, %284 : vector<8x16xf32>
    %286 = arith.mulf %273, %285 : vector<8x16xf32>
    %287 = arith.addf %282, %286 : vector<8x16xf32>
    %288 = math.tanh %287 : vector<8x16xf32>
    %cst_85 = arith.constant 1.000000e+00 : f32
    %289 = vector.broadcast %cst_85 : f32 to vector<8x16xf32>
    %290 = arith.subf %289, %281 : vector<8x16xf32>
    %291 = arith.mulf %290, %288 : vector<8x16xf32>
    %292 = arith.mulf %281, %265 : vector<8x16xf32>
    %293 = arith.addf %291, %292 : vector<8x16xf32>
    %c3_i32_86 = arith.constant 3 : i32
    %294 = arith.subi %c3_i32_86, %c3_i32_79 : i32
    %295 = arith.index_cast %294 : i32 to index
    %c0_87 = arith.constant 0 : index
    %c0_88 = arith.constant 0 : index
    %296 = vector.load %arg14[%295, %c0_87, %c0_88] : memref<4x8x48xf32, #tpu.memory_space<vmem>>, vector<1x8x48xf32>
    %297 = vector.shape_cast %296 : vector<1x8x48xf32> to vector<8x48xf32>
    %298 = vector.extract_strided_slice %258 {offsets = [0, 16], sizes = [8, 16], strides = [1, 1]} : vector<8x32xf32> to vector<8x16xf32>
    %299 = vector.extract_strided_slice %297 {offsets = [0, 0], sizes = [8, 16], strides = [1, 1]} : vector<8x48xf32> to vector<8x16xf32>
    %300 = vector.extract_strided_slice %261 {offsets = [0, 0], sizes = [8, 16], strides = [1, 1]} : vector<8x48xf32> to vector<8x16xf32>
    %301 = arith.addf %299, %300 : vector<8x16xf32>
    %302 = arith.negf %301 : vector<8x16xf32>
    %303 = math.exp %302 : vector<8x16xf32>
    %cst_89 = arith.constant 1.000000e+00 : f32
    %304 = vector.broadcast %cst_89 : f32 to vector<8x16xf32>
    %305 = arith.addf %304, %303 : vector<8x16xf32>
    %306 = arith.divf %304, %305 : vector<8x16xf32>
    %307 = vector.extract_strided_slice %297 {offsets = [0, 16], sizes = [8, 16], strides = [1, 1]} : vector<8x48xf32> to vector<8x16xf32>
    %308 = vector.extract_strided_slice %261 {offsets = [0, 16], sizes = [8, 16], strides = [1, 1]} : vector<8x48xf32> to vector<8x16xf32>
    %309 = arith.addf %307, %308 : vector<8x16xf32>
    %310 = arith.negf %309 : vector<8x16xf32>
    %311 = math.exp %310 : vector<8x16xf32>
    %cst_90 = arith.constant 1.000000e+00 : f32
    %312 = vector.broadcast %cst_90 : f32 to vector<8x16xf32>
    %313 = arith.addf %312, %311 : vector<8x16xf32>
    %314 = arith.divf %312, %313 : vector<8x16xf32>
    %315 = vector.extract_strided_slice %297 {offsets = [0, 32], sizes = [8, 16], strides = [1, 1]} : vector<8x48xf32> to vector<8x16xf32>
    %316 = vector.extract_strided_slice %261 {offsets = [0, 32], sizes = [8, 16], strides = [1, 1]} : vector<8x48xf32> to vector<8x16xf32>
    %317 = vector.broadcast %23 : vector<1x16xf32> to vector<8x16xf32>
    %318 = arith.addf %316, %317 : vector<8x16xf32>
    %319 = arith.mulf %306, %318 : vector<8x16xf32>
    %320 = arith.addf %315, %319 : vector<8x16xf32>
    %321 = math.tanh %320 : vector<8x16xf32>
    %cst_91 = arith.constant 1.000000e+00 : f32
    %322 = vector.broadcast %cst_91 : f32 to vector<8x16xf32>
    %323 = arith.subf %322, %314 : vector<8x16xf32>
    %324 = arith.mulf %323, %321 : vector<8x16xf32>
    %325 = arith.mulf %314, %298 : vector<8x16xf32>
    %326 = arith.addf %324, %325 : vector<8x16xf32>
    %327 = arith.index_cast %c3_i32_79 : i32 to index
    %c0_92 = arith.constant 0 : index
    %c0_93 = arith.constant 0 : index
    %328 = vector.load %arg10[%327, %c0_92, %c0_93] : memref<4x8x16xf32, #tpu.memory_space<vmem>>, vector<1x8x16xf32>
    %329 = vector.shape_cast %328 : vector<1x8x16xf32> to vector<8x16xf32>
    %330 = vector.shape_cast %293 : vector<8x16xf32> to vector<1x8x16xf32>
    tpu.vector_store %arg10[%327, %c0_92, %c0_93], %330 {strides = array<i32>} : memref<4x8x16xf32, #tpu.memory_space<vmem>>, vector<1x8x16xf32>,
    %c3_i32_94 = arith.constant 3 : i32
    %331 = arith.subi %c3_i32_94, %c3_i32_79 : i32
    %332 = arith.index_cast %331 : i32 to index
    %c0_95 = arith.constant 0 : index
    %c0_96 = arith.constant 0 : index
    %333 = vector.load %arg11[%332, %c0_95, %c0_96] : memref<4x8x16xf32, #tpu.memory_space<vmem>>, vector<1x8x16xf32>
    %334 = vector.shape_cast %333 : vector<1x8x16xf32> to vector<8x16xf32>
    %335 = vector.shape_cast %326 : vector<8x16xf32> to vector<1x8x16xf32>
    tpu.vector_store %arg11[%332, %c0_95, %c0_96], %335 {strides = array<i32>} : memref<4x8x16xf32, #tpu.memory_space<vmem>>, vector<1x8x16xf32>,
    %336 = tpu.concatenate %293, %326 in 1 : vector<8x16xf32>, vector<8x16xf32> -> vector<8x32xf32>
    %c4_i32 = arith.constant 4 : i32
    %c0_97 = arith.constant 0 : index
    %c0_98 = arith.constant 0 : index
    %337 = vector.load %arg12[%c0_97, %c0_98] : memref<8x32xf32, #tpu.memory_space<vmem>>, vector<8x32xf32>
    tpu.vector_store %arg12[%c0_97, %c0_98], %336 {strides = array<i32>} : memref<8x32xf32, #tpu.memory_space<vmem>>, vector<8x32xf32>,
    return
  }
  func.func @transform_0(%arg0: i32, %arg1: i32) -> (i32, i32, i32) {
    %c0_i32 = arith.constant 0 : i32
    %c0_i32_0 = arith.constant 0 : i32
    return %arg1, %arg0, %c0_i32 : i32, i32, i32
  }
  func.func @transform_1(%arg0: i32, %arg1: i32) -> (i32, i32, i32) {
    %c3_i32 = arith.constant 3 : i32
    %0 = arith.subi %c3_i32, %arg1 : i32
    %c0_i32 = arith.constant 0 : i32
    %c0_i32_0 = arith.constant 0 : i32
    return %0, %arg0, %c0_i32 : i32, i32, i32
  }
  func.func @transform_2(%arg0: i32, %arg1: i32) -> (i32, i32) {
    %c0_i32 = arith.constant 0 : i32
    %c0_i32_0 = arith.constant 0 : i32
    %c0_i32_1 = arith.constant 0 : i32
    return %c0_i32, %c0_i32_0 : i32, i32
  }
  func.func @transform_3(%arg0: i32, %arg1: i32) -> (i32, i32) {
    %c0_i32 = arith.constant 0 : i32
    %c0_i32_0 = arith.constant 0 : i32
    %c0_i32_1 = arith.constant 0 : i32
    return %c0_i32, %c0_i32_0 : i32, i32
  }
  func.func @transform_4(%arg0: i32, %arg1: i32) -> (i32, i32) {
    %c0_i32 = arith.constant 0 : i32
    %c0_i32_0 = arith.constant 0 : i32
    %c0_i32_1 = arith.constant 0 : i32
    return %c0_i32, %c0_i32_0 : i32, i32
  }
  func.func @transform_5(%arg0: i32, %arg1: i32) -> (i32, i32) {
    %c0_i32 = arith.constant 0 : i32
    %c0_i32_0 = arith.constant 0 : i32
    %c0_i32_1 = arith.constant 0 : i32
    return %c0_i32, %c0_i32_0 : i32, i32
  }
  func.func @transform_6(%arg0: i32, %arg1: i32) -> (i32, i32) {
    %c0_i32 = arith.constant 0 : i32
    %c0_i32_0 = arith.constant 0 : i32
    %c0_i32_1 = arith.constant 0 : i32
    return %c0_i32, %c0_i32_0 : i32, i32
  }
  func.func @transform_7(%arg0: i32, %arg1: i32) -> (i32, i32) {
    %c0_i32 = arith.constant 0 : i32
    %c0_i32_0 = arith.constant 0 : i32
    %c0_i32_1 = arith.constant 0 : i32
    return %c0_i32, %c0_i32_0 : i32, i32
  }
  func.func @transform_8(%arg0: i32, %arg1: i32) -> (i32, i32, i32) {
    %c0_i32 = arith.constant 0 : i32
    %c0_i32_0 = arith.constant 0 : i32
    return %arg1, %arg0, %c0_i32 : i32, i32, i32
  }
  func.func @transform_9(%arg0: i32, %arg1: i32) -> (i32, i32, i32) {
    %c3_i32 = arith.constant 3 : i32
    %0 = arith.subi %c3_i32, %arg1 : i32
    %c0_i32 = arith.constant 0 : i32
    %c0_i32_0 = arith.constant 0 : i32
    return %0, %arg0, %c0_i32 : i32, i32, i32
  }
}

</mosaic_0001>

<bundles_post_ra>
// kernel: tpu_custom_call.1
= control target key start
LH: loop header
LB: loop body
LE: loop exit
PB: predicated region body
PF: predicated region fallthrough
CT: control target
= control target key end

     0   :  { %s3181_s0 = inlined_call_operand.hbm [shape: f32[16,8,32], index: 0, kind: input, shape index: {}]   ;;  %s3182_s1 = inlined_call_operand.hbm [shape: f32[16,8,32], index: 1, kind: input, shape index: {}]   ;;  %s3183_s2 = inlined_call_operand.hbm [shape: f32[32,48], index: 2, kind: input, shape index: {}]   ;;  %s3184_s3 = inlined_call_operand.hbm [shape: f32[32,48], index: 3, kind: input, shape index: {}]   ;;  %s3185_s4 = inlined_call_operand.hbm [shape: f32[1,48], index: 4, kind: input, shape index: {}]   ;;  %s3186_s5 = inlined_call_operand.hbm [shape: f32[1,48], index: 5, kind: input, shape index: {}]   ;;  %s3187_s6 = inlined_call_operand.hbm [shape: f32[32,96], index: 6, kind: input, shape index: {}]   ;;  %s3188_s7 = inlined_call_operand.hbm [shape: f32[1,32], index: 7, kind: input, shape index: {}]   ;;  %s3189_s8 = inlined_call_operand.hbm [shape: f32[16,8,16], index: 8, kind: output, shape index: {0}]   ;;  %s3190_s9 = inlined_call_operand.hbm [shape: f32[16,8,16], index: 9, kind: output, shape index: {1}]  }
   0x1   :  { %3211 = sst [smem:[#allocation33_spill]] %s3181_s0 }
   0x2   :  { %3212 = sst [smem:[#allocation34_spill]] %s3182_s1 }
   0x3   :  { %3213 = sst [smem:[#allocation35_spill]] %s3183_s2 }
   0x4   :  { %3214 = sst [smem:[#allocation36_spill]] %s3184_s3 }
   0x5   :  { %3215 = sst [smem:[#allocation37_spill]] %s3185_s4 }
   0x6   :  { %3216 = sst [smem:[#allocation38_spill]] %s3186_s5 }
   0x7   :  { %3217 = sst [smem:[#allocation39_spill]] %s3187_s6 }
   0x8   :  { %3218 = sst [smem:[#allocation40_spill]] %s3188_s7 }
   0x9   :  { %3219 = sst [smem:[#allocation41_spill]] %s3189_s8 }
   0xa   :  { %3220 = sst [smem:[#allocation42_spill]] %s3190_s9 }
   0xb   :  { %15 = vsyncpa [#allocation6], 0 }
   0xc   :  { %17 = vsyncpa [#allocation6 + $0x1], 0 }
   0xd   :  { %18 = vsyncpa [#allocation9], 0 }
   0xe   :  { %20 = vsyncpa [#allocation9 + $0x1], 0 }
   0xf   :  { %21 = vsyncpa [#allocation12], 0 }
  0x10   :  { %22 = vsyncpa [#allocation15], 0 }
  0x11   :  { %23 = vsyncpa [#allocation18], 0 }
  0x12   :  { %24 = vsyncpa [#allocation7], 0 }
  0x13   :  { %26 = vsyncpa [#allocation7 + $0x1], 0 }
  0x14   :  { %27 = vsyncpa [#allocation21], 0 }
  0x15   :  { %29 = vsyncpa [#allocation21 + $0x1], 0  ;;  %s2514_s30 = smov 0   ;;  %s2516_s10 = smov 0  }
  0x16   :  { %s2518_s11 = smov 0   ;;  %s2520_s12 = smov 0  }
  0x17   :  { %s2522_s13 = smov 0   ;;  %s2524_s14 = smov 0  }
  0x18   :  { %s2526_s15 = smov 0   ;;  %s2528_s16 = smov 0  }
  0x19   :  { %s2530_s17 = smov 0  }
  0x1a LB: > { %3221 = sst [smem:[#allocation30_spill]] %s2405_s30  ;;  %s2560_s18 = sadd.s32 4294967295, %s2437_s17   ;;  %s2437_s17 = sphi %s2530_s17, %s35_s17   ;;  %s2433_s16 = sphi %s2528_s16, %s3282_s16   ;;  %s2429_s15 = sphi %s2526_s15, %s3281_s15   ;;  %s2425_s14 = sphi %s2524_s14, %s3280_s14   ;;  %s2421_s13 = sphi %s2522_s13, %s3279_s13   ;;  %s2417_s12 = sphi %s2520_s12, %s3278_s12   ;;  %s2413_s11 = sphi %s2518_s11, %s3277_s11   ;;  %s2409_s10 = sphi %s2516_s10, %s3276_s10   ;;  %s2405_s30 = sphi %s2514_s30, %s3275_s30  }
  0x1b   : > { %3222 = sst [smem:[#allocation31_spill]] %s2429_s15  ;;  %p1616_p0 = scmp.ge.s32.totalorder %s2437_s17, 1 }
  0x1c   : > { %p3196_p1 = scmp.eq.s32.totalorder %s2560_s18, 0  ;;  %p294_p2 = scmp.lt.s32.totalorder %s2437_s17, 5 }
  0x1d   : > { %s2439_s20 = smov [#allocation10]   ;;  %s2440_s23 = smov [#allocation11]  }
  0x1e   : > { %p2565_p3 = pnand %p1616_p0, %p294_p2  ;;  %s306_s21 = sshll.u32 %s2439_s20, 4  ;;  %s2569_s21 = int_to_ptr.vmem [resolvable:$true] %s306_s21 }
  0x1f   : > { %s319_s24 = sshll.u32 %s2440_s23, 4  ;;  %s2441_s25 = smov [#allocation14]   ;;  %s2579_s24 = int_to_ptr.vmem [resolvable:$true] %s319_s24 }
  0x20   : > { %s3223_s19 = scalar_select %p2565_p3, 1, 0 }
  0x21   : > { %p1863_p4 = pneg %p2565_p3  ;;  %s2581_s26 = sshll.u32 %s2441_s25, 4  ;;  %s345_s26 = int_to_ptr.vmem [resolvable:$true] %s2581_s26 }
  0x22   : > { %3224 = sst [smem:[#allocation32_spill]] %s3223_s19  ;;  %s3226_s2 = sld [smem:[#allocation35_spill]] }
  0x23   : > { %p2575_p5 = pnand %p1863_p4, %p3196_p1 }
  0x25   : > { %p2591_p7 = pneg %p2575_p5 }
  0x28   : > { %s2051_s29 = scalar_lea.hbm %s3226_s2, 512 }
  0x29   : > { %p2052_p6 = scmp.ne.s32.totalorder %s3226_s2, %s2051_s29  ;;  %p2058_p10 = scmp.lt.u32.totalorder %s2051_s29, %s3226_s2 }
  0x2b   : > { %p2054_p8 = pnand %p2591_p7, %p2052_p6 }
  0x2d   : > { %p2055_p9 = pneg %p2054_p8 }
  0x2f   : > { %p2060_p11 = pnand %p2058_p10, %p2055_p9 }
  0x31   : > { %2063 = shalt.err (!%p2060_p11)
}
  0x32   : > { %s2064_s9 = scalar_lea.vmem %s2569_s21, 512  ;;  %p2072_p2 = scmp.lt.s32.totalorder %s2569_s21, %s2569_s21 }
  0x33   : > { %p2065_p12 = scmp.ne.s32.totalorder %s2569_s21, %s2064_s9  ;;  %p2073_p4 = scmp.lt.s32.totalorder %s2064_s9, %s2064_s9 }
  0x35   : > { %p2067_p13 = pnand %p2065_p12, %p2591_p7  ;;  %p2074_p6 = por %p2073_p4, %p2072_p2 }
  0x37   : > { %p2068_p0 = pneg %p2067_p13 }
  0x39   : > { %p2075_p8 = pnand %p2074_p6, %p2068_p0 }
  0x3b   : > { %2078 = shalt.err (!%p2075_p8)
}
  0x3c   : > { %s3198_s27 = smov 128   ;;  %s3200_s28 = smov 8  }
  0x3d   : > { %1866 = dma.hbm_to_vmem [thread:$0]  (!%p2575_p5), %s3226_s2, 512, %s2569_s21, [#allocation9], %s3198_s27, %s3198_s27, %s3200_s28  }
  0x3e   : > { %s3228_s3 = sld [smem:[#allocation36_spill]] }
  0x44   : > { %s2079_s9 = scalar_lea.hbm %s3228_s3, 512 }
  0x45   : > { %p2080_p9 = scmp.ne.s32.totalorder %s3228_s3, %s2079_s9  ;;  %p2086_p12 = scmp.lt.u32.totalorder %s2079_s9, %s3228_s3 }
  0x47   : > { %p2082_p10 = pnand %p2080_p9, %p2591_p7 }
  0x49   : > { %p2083_p11 = pneg %p2082_p10 }
  0x4b   : > { %p2088_p13 = pnand %p2086_p12, %p2083_p11 }
  0x4d   : > { %2091 = shalt.err (!%p2088_p13)
}
  0x4e   : > { %s2092_s21 = scalar_lea.vmem %s2579_s24, 512  ;;  %p2100_p6 = scmp.lt.s32.totalorder %s2579_s24, %s2579_s24 }
  0x4f   : > { %p2093_p0 = scmp.ne.s32.totalorder %s2579_s24, %s2092_s21  ;;  %p2101_p8 = scmp.lt.s32.totalorder %s2092_s21, %s2092_s21 }
  0x51   : > { %p2095_p2 = pnand %p2093_p0, %p2591_p7  ;;  %p2102_p9 = por %p2101_p8, %p2100_p6 }
  0x53   : > { %p2096_p4 = pneg %p2095_p2 }
  0x55   : > { %p2103_p10 = pnand %p2102_p9, %p2096_p4 }
  0x57   : > { %2106 = shalt.err (!%p2103_p10)
}
  0x58   : > { %1869 = dma.hbm_to_vmem [thread:$0]  (!%p2575_p5), %s3228_s3, 512, %s2579_s24, [#allocation12], %s3198_s27, %s3198_s27, %s3200_s28  }
  0x59   : > { %s3229_s5 = sld [smem:[#allocation38_spill]] }
  0x5f   : > { %s2107_s29 = scalar_lea.hbm %s3229_s5, 16 }
  0x60   : > { %p2108_p11 = scmp.ne.s32.totalorder %s3229_s5, %s2107_s29  ;;  %p2114_p0 = scmp.lt.u32.totalorder %s2107_s29, %s3229_s5 }
  0x62   : > { %p2110_p12 = pnand %p2108_p11, %p2591_p7 }
  0x64   : > { %p2111_p13 = pneg %p2110_p12 }
  0x66   : > { %p2116_p2 = pnand %p2114_p0, %p2111_p13 }
  0x68   : > { %2119 = shalt.err (!%p2116_p2)
}
  0x69   : > { %s2120_s21 = scalar_lea.vmem %s345_s26, 16  ;;  %s2127_s24 = scalar_lea.vmem %s345_s26, 32 }
  0x6a   : > { %p2121_p4 = scmp.ne.s32.totalorder %s345_s26, %s2120_s21  ;;  %p2128_p9 = scmp.lt.s32.totalorder %s345_s26, %s345_s26 }
  0x6b   : > { %p2129_p10 = scmp.lt.s32.totalorder %s2127_s24, %s2120_s21 }
  0x6c   : > { %p2123_p6 = pnand %p2121_p4, %p2591_p7 }
  0x6d   : > { %p2130_p1 = por %p2129_p10, %p2128_p9 }
  0x6e   : > { %p2124_p8 = pneg %p2123_p6 }
  0x70   : > { %p2131_p3 = pnand %p2130_p1, %p2124_p8 }
  0x72   : > { %2134 = shalt.err (!%p2131_p3)
}
  0x73   : > { %1875 = dma.hbm_to_vmem [thread:$0]  (!%p2575_p5), %s3229_s5, 16, %s345_s26, [#allocation15]  }
  0x74   : > { %s2444_s15 = smov [#allocation13]   ;;  %s2445_s29 = smov [#allocation16]  }
  0x75   : > { %s333_s19 = sshll.u32 %s2444_s15, 4  ;;  %s354_s20 = sshll.u32 %s2445_s29, 4  ;;  %s334_s19 = int_to_ptr.vmem [resolvable:$true] %s333_s19  ;;  %s355_s20 = int_to_ptr.vmem [resolvable:$true] %s354_s20 }
  0x76   : > { %s3230_s4 = sld [smem:[#allocation37_spill]] }
  0x7c   : > { %s2135_s9 = scalar_lea.hbm %s3230_s4, 16 }
  0x7d   : > { %p2136_p1 = scmp.ne.s32.totalorder %s3230_s4, %s2135_s9  ;;  %p2142_p12 = scmp.lt.u32.totalorder %s2135_s9, %s3230_s4 }
  0x7f   : > { %p2138_p3 = pnand %p2136_p1, %p2591_p7 }
  0x81   : > { %p2139_p11 = pneg %p2138_p3 }
  0x83   : > { %p2144_p13 = pnand %p2142_p12, %p2139_p11 }
  0x85   : > { %2147 = shalt.err (!%p2144_p13)
}
  0x86   : > { %s2148_s26 = scalar_lea.vmem %s334_s19, 16  ;;  %s2155_s30 = scalar_lea.vmem %s334_s19, 32 }
  0x87   : > { %p2149_p0 = scmp.ne.s32.totalorder %s334_s19, %s2148_s26  ;;  %p2156_p6 = scmp.lt.s32.totalorder %s334_s19, %s334_s19 }
  0x88   : > { %p2157_p8 = scmp.lt.s32.totalorder %s2155_s30, %s2148_s26 }
  0x89   : > { %p2151_p2 = pnand %p2149_p0, %p2591_p7 }
  0x8a   : > { %p2158_p9 = por %p2157_p8, %p2156_p6 }
  0x8b   : > { %p2152_p4 = pneg %p2151_p2 }
  0x8d   : > { %p2159_p10 = pnand %p2158_p9, %p2152_p4 }
  0x8f   : > { %2162 = shalt.err (!%p2159_p10)
}
  0x90   : > { %1872 = dma.hbm_to_vmem [thread:$0]  (!%p2575_p5), %s3230_s4, 16, %s334_s19, [#allocation12]  }
  0x91   : > { %s3231_s6 = sld [smem:[#allocation39_spill]] }
  0x97   : > { %s2163_s25 = scalar_lea.hbm %s3231_s6, 512 }
  0x98   : > { %p2164_p1 = scmp.ne.s32.totalorder %s3231_s6, %s2163_s25  ;;  %p2170_p12 = scmp.lt.u32.totalorder %s2163_s25, %s3231_s6 }
  0x9a   : > { %p2166_p3 = pnand %p2164_p1, %p2591_p7 }
  0x9c   : > { %p2167_p11 = pneg %p2166_p3 }
  0x9e   : > { %p2172_p13 = pnand %p2170_p12, %p2167_p11 }
  0xa0   : > { %2175 = shalt.err (!%p2172_p13)
}
  0xa1   : > { %s2176_s26 = scalar_lea.vmem %s355_s20, 512  ;;  %p2184_p6 = scmp.lt.s32.totalorder %s355_s20, %s355_s20 }
  0xa2   : > { %p2177_p0 = scmp.ne.s32.totalorder %s355_s20, %s2176_s26  ;;  %p2185_p8 = scmp.lt.s32.totalorder %s2176_s26, %s2176_s26 }
  0xa4   : > { %p2179_p2 = pnand %p2177_p0, %p2591_p7  ;;  %p2186_p9 = por %p2185_p8, %p2184_p6 }
  0xa6   : > { %p2180_p4 = pneg %p2179_p2 }
  0xa8   : > { %p2187_p10 = pnand %p2186_p9, %p2180_p4 }
  0xaa   : > { %2190 = shalt.err (!%p2187_p10)
}
  0xab   : > { %s3232_s19 = smov 128   ;;  %s2446_s29 = smov [#allocation17]  }
  0xac   : > { %1878 = dma.hbm_to_vmem [thread:$0]  (!%p2575_p5), %s3231_s6, 512, %s355_s20, [#allocation15], %s3232_s19, %s3232_s19, %s3200_s28  }
  0xad   : > { %s368_s27 = sshll.u32 %s2446_s29, 4  ;;  %s3233_s7 = sld [smem:[#allocation40_spill]]  ;;  %s369_s27 = int_to_ptr.vmem [resolvable:$true] %s368_s27 }
  0xb3   : > { %s2191_s9 = scalar_lea.hbm %s3233_s7, 16 }
  0xb4   : > { %p2192_p1 = scmp.ne.s32.totalorder %s3233_s7, %s2191_s9  ;;  %p2198_p12 = scmp.lt.u32.totalorder %s2191_s9, %s3233_s7 }
  0xb6   : > { %p2194_p3 = pnand %p2192_p1, %p2591_p7 }
  0xb8   : > { %p2195_p11 = pneg %p2194_p3 }
  0xba   : > { %p2200_p13 = pnand %p2198_p12, %p2195_p11 }
  0xbc   : > { %2203 = shalt.err (!%p2200_p13)
}
  0xbd   : > { %s2204_s20 = scalar_lea.vmem %s369_s27, 16  ;;  %s2211_s30 = scalar_lea.vmem %s369_s27, 32 }
  0xbe   : > { %p2205_p0 = scmp.ne.s32.totalorder %s369_s27, %s2204_s20  ;;  %p2212_p6 = scmp.lt.s32.totalorder %s369_s27, %s369_s27 }
  0xbf   : > { %p2213_p8 = scmp.lt.s32.totalorder %s2211_s30, %s2204_s20 }
  0xc0   : > { %p2207_p2 = pnand %p2205_p0, %p2591_p7 }
  0xc1   : > { %p2214_p9 = por %p2213_p8, %p2212_p6 }
  0xc2   : > { %p2208_p4 = pneg %p2207_p2 }
  0xc4   : > { %p2215_p10 = pnand %p2214_p9, %p2208_p4 }
  0xc6   : > { %2218 = shalt.err (!%p2215_p10)
}
  0xc7   : > { %1881 = dma.hbm_to_vmem [thread:$0]  (!%p2575_p5), %s3233_s7, 16, %s369_s27, [#allocation18]  }
  0xc8   : > { %s1615_s8 = sadd.s32 4294967294, %s2437_s17   ;;  %s44_s22 = sadd.s32 1, %s2433_s16 }
  0xc9   : > { %p45_p7 = scmp.ge.s32.totalorder %s44_s22, 4  ;;  %s56_s23 = sadd.s32 1, %s2425_s14 }
  0xca   : > { %p63_p1 = scmp.ne.s32.totalorder %s2425_s14, %s2421_s13  ;;  %p3204_p3 = scmp.eq.s32.totalorder %s2437_s17, 0 }
  0xcb   : > { %s3284_s22 = smov (%p45_p7, %s44_s22), 0  ;;  %p69_p12 = scmp.ne.s32.totalorder %s2421_s13, %s2417_s12 }
  0xcc   : > { %p2727_p11 = por %p3204_p3, %p63_p1  ;;  %s51_s27 = ssub.s32 %s2433_s16, %s3284_s22 }
  0xcd   : > { %p3203_p5 = scmp.eq.s32.totalorder %s2560_s18, 3  ;;  %p54_p13 = scmp.eq.s32.totalorder %s51_s27, 0 }
  0xce   : > { %p3235_p0 = scmp.eq.s32.totalorder %s2560_s18, 0  ;;  %p2748_p6 = scmp.eq.s32.totalorder %s1615_s8, 3 }
  0xcf   : > { %p2744_p4 = por %p3203_p5, %p63_p1  ;;  %p3202_p9 = scmp.lt.s32.totalorder %s2437_s17, 4 }
  0xd0   : > { %p2738_p2 = por %p3235_p0, %p69_p12  ;;  %p2757_p8 = por %p2748_p6, %p69_p12 }
  0xd1   : > { %s3237_s21 = scalar_select %p2744_p4, 1, 0 }
  0xd2   : > { %s3236_s9 = scalar_select %p2738_p2, 1, 0 }
  0xd3   : > { %s2753_s1 = scalar_select %p54_p13, %s2425_s14, %s56_s23  }
  0xd4   : > { %s3239_s26 = scalar_select %p2757_p8, 1, 0 }
  0xd5   : > { %s379_s20 = sand.u32 1, %s2425_s14   ;;  %s1679_s30 = sshll.u32 %s2433_s16, 9 }
  0xd6   : > { %s1624_s15 = sshll.u32 %s379_s20, 5  ;;  %s3240_s0 = sld [smem:[#allocation33_spill]] }
  0xd7   : > { %s383_s8 = scalar_lea.vmem [#allocation5], %s1624_s15  ;;  %p2773_p10 = pnand %p3202_p9, %p2727_p11 }
  0xd8   : > { %s391_s23 = sshll.u32 %s383_s8, 4  ;;  %s2779_s3 = scalar_lea.sflag [#allocation6], %s379_s20  ;;  %s2777_s23 = int_to_ptr.vmem [resolvable:$true] %s391_s23 }
  0xd9   : > { %p2221_p1 = pneg %p2773_p10 }
  0xdc   : > { %s2767_s28 = scalar_lea.hbm %s3240_s0, %s1679_s30  ;;  %s2224_s29 = scalar_lea.hbm %s3240_s0, 2048 }
  0xdd   : > { %s2219_s30 = scalar_lea.hbm %s2767_s28, 512  ;;  %p2225_p11 = scmp.lt.u32.totalorder %s2767_s28, %s3240_s0 }
  0xde   : > { %p2220_p7 = scmp.ne.s32.totalorder %s2767_s28, %s2219_s30  ;;  %p2226_p0 = scmp.lt.u32.totalorder %s2224_s29, %s2219_s30 }
  0xdf   : > { %p2228_p5 = scmp.lt.u32.totalorder %s2219_s30, %s2767_s28 }
  0xe0   : > { %p2222_p12 = pnand %p2221_p1, %p2220_p7  ;;  %p2227_p9 = por %p2226_p0, %p2225_p11 }
  0xe2   : > { %p2223_p13 = pneg %p2222_p12  ;;  %p2229_p3 = por %p2228_p5, %p2227_p9 }
  0xe4   : > { %p2230_p8 = pnand %p2229_p3, %p2223_p13 }
  0xe6   : > { %2233 = shalt.err (!%p2230_p8)
}
  0xe7   : > { %s2234_s20 = scalar_lea.vmem %s2777_s23, 512  ;;  %s2447_s25 = smov [#allocation5]  }
  0xe8   : > { %p2235_p7 = scmp.ne.s32.totalorder %s2777_s23, %s2234_s20  ;;  %s2239_s15 = sshll.u32 %s2447_s25, 4  ;;  %s2240_s15 = int_to_ptr.vmem [resolvable:$false] %s2239_s15 }
  0xe9   : > { %s2241_s27 = scalar_lea.vmem %s2240_s15, 1024  ;;  %p2242_p2 = scmp.lt.s32.totalorder %s2777_s23, %s2240_s15 }
  0xea   : > { %p2237_p12 = pnand %p2235_p7, %p2221_p1  ;;  %p2243_p11 = scmp.lt.s32.totalorder %s2241_s27, %s2234_s20 }
  0xec   : > { %p2238_p4 = pneg %p2237_p12  ;;  %p2244_p0 = por %p2243_p11, %p2242_p2 }
  0xee   : > { %p2245_p5 = pnand %p2244_p0, %p2238_p4 }
  0xf0   : > { %2248 = shalt.err (!%p2245_p5)
}
  0xf1   : > { %s3242_s30 = smov 8   ;;  %s3243_s29 = sld [smem:[#allocation30_spill]] }
  0xf2   : > { %1885 = dma.hbm_to_vmem [thread:$0]  (!%p2773_p10), %s2767_s28, 512, %s2777_s23, %s2779_s3, %s3232_s19, %s3232_s19, %s3242_s30  }
  0xf3   : > { %s79_s2 = ssub.s32 3, %s2433_s16  ;;  %s80_s8 = ssub.s32 3, %s3284_s22 }
  0xf4   : > { %s81_s20 = ssub.s32 %s79_s2, %s80_s8  ;;  %s86_s25 = sadd.s32 1, %s2413_s11 }
  0xf5   : > { %p84_p3 = scmp.eq.s32.totalorder %s81_s20, 0  ;;  %p93_p2 = scmp.ne.s32.totalorder %s2413_s11, %s2409_s10 }
  0xf6   : > { %s401_s15 = sand.u32 1, %s2437_s17   ;;  %p3244_p8 = scmp.eq.s32.totalorder %s2437_s17, 0 }
  0xf7   : > { %p99_p4 = scmp.ne.s32.totalorder %s2409_s10, %s3243_s29  ;;  %p3245_p1 = scmp.eq.s32.totalorder %s2560_s18, 0 }
  0xf8   : > { %s2819_s27 = scalar_select %p84_p3, %s2413_s11, %s86_s25  }
  0xf9   : > { %p95_p9 = por %p93_p2, %p3244_p8  ;;  %p2825_p13 = por %p99_p4, %p3245_p1 }
  0xfa   : > { %p3247_p7 = scmp.eq.s32.totalorder %s2560_s18, 3  ;;  %p2837_p12 = por %p2748_p6, %p99_p4 }
  0xfb   : > { %s403_s23 = sand.u32 1, %s2413_s11   ;;  %s1680_s8 = sshll.u32 %s79_s2, 9 }
  0xfc   : > { %p2831_p10 = por %p3247_p7, %p93_p2  ;;  %s1627_s29 = sshll.u32 %s403_s23, 5 }
  0xfd   : > { %s3249_s28 = scalar_select %p2837_p12, 1, 0 }
  0xfe   : > { %s3248_s3 = scalar_select %p2831_p10, 1, 0 }
  0xff   : > { %s3250_s4 = sld [smem:[#allocation34_spill]]  ;;  %s405_s6 = scalar_lea.vmem [#allocation8], %s1627_s29 }
 0x100   : > { %s414_s7 = sshll.u32 %s405_s6, 4  ;;  %p3251_p11 = scmp.lt.s32.totalorder %s2437_s17, 4  ;;  %s2853_s7 = int_to_ptr.vmem [resolvable:$true] %s414_s7 }
 0x101   : > { %s2855_s2 = scalar_lea.sflag [#allocation9], %s401_s15 }
 0x102   : > { %p2849_p0 = pnand %p3251_p11, %p95_p9 }
 0x104   : > { %p2251_p5 = pneg %p2849_p0 }
 0x105   : > { %s2845_s5 = scalar_lea.hbm %s3250_s4, %s1680_s8  ;;  %s2254_s8 = scalar_lea.hbm %s3250_s4, 2048 }
 0x106   : > { %s2249_s23 = scalar_lea.hbm %s2845_s5, 512  ;;  %p2255_p4 = scmp.lt.u32.totalorder %s2845_s5, %s3250_s4 }
 0x107   : > { %p2250_p6 = scmp.ne.s32.totalorder %s2845_s5, %s2249_s23  ;;  %p2256_p8 = scmp.lt.u32.totalorder %s2254_s8, %s2249_s23 }
 0x108   : > { %p2258_p1 = scmp.lt.u32.totalorder %s2249_s23, %s2845_s5 }
 0x109   : > { %p2252_p3 = pnand %p2251_p5, %p2250_p6  ;;  %p2257_p9 = por %p2256_p8, %p2255_p4 }
 0x10b   : > { %p2253_p2 = pneg %p2252_p3  ;;  %p2259_p7 = por %p2258_p1, %p2257_p9 }
 0x10d   : > { %p2260_p11 = pnand %p2259_p7, %p2253_p2 }
 0x10f   : > { %2263 = shalt.err (!%p2260_p11)
}
 0x110   : > { %s2264_s15 = scalar_lea.vmem %s2853_s7, 512  ;;  %s2448_s6 = smov [#allocation8]  }
 0x111   : > { %p2265_p6 = scmp.ne.s32.totalorder %s2853_s7, %s2264_s15  ;;  %s2269_s29 = sshll.u32 %s2448_s6, 4  ;;  %s2270_s29 = int_to_ptr.vmem [resolvable:$false] %s2269_s29 }
 0x112   : > { %s2271_s20 = scalar_lea.vmem %s2270_s29, 1024  ;;  %p2272_p10 = scmp.lt.s32.totalorder %s2853_s7, %s2270_s29 }
 0x113   : > { %p2267_p3 = pnand %p2265_p6, %p2251_p5  ;;  %p2273_p4 = scmp.lt.s32.totalorder %s2271_s20, %s2264_s15 }
 0x115   : > { %p2268_p12 = pneg %p2267_p3  ;;  %p2274_p8 = por %p2273_p4, %p2272_p10 }
 0x117   : > { %p2275_p9 = pnand %p2274_p8, %p2268_p12 }
 0x119   : > { %2278 = shalt.err (!%p2275_p9)
}
 0x11a   : > { %1888 = dma.hbm_to_vmem [thread:$0]  (!%p2849_p0), %s2845_s5, 512, %s2853_s7, %s2855_s2, %s3232_s19, %s3232_s19, %s3242_s30  }
 0x11b   : > { %s3253_s23 = sld [smem:[#allocation32_spill]] }
 0x121   : > { %p3254_p5 = scmp.ne.s32.totalorder %s3253_s23, 0 }
 0x122   : > { %s2889_s8 = sand.u32 (!%p3254_p5), 1, %s2421_s13   ;;  %p3255_p10 = scmp.ne.s32.totalorder (!%p3254_p5), %s3236_s9, 0 }
 0x123   : > { %426 = sbr.rel (%p3254_p5) target bundleno = 3170 (0xc62), region = 52  ;;  %s1631_s25 = sshll.u32 (!%p3254_p5), %s2889_s8, 5 }
 0x124   : > { %s429_s15 = scalar_lea.sflag (!%p3254_p5), [#allocation6], %s2889_s8  ;;  %s2893_s6 = scalar_lea.vmem (!%p3254_p5), [#allocation5], %s1631_s25 }
 0x12a   : > { %2372 = dma.done.wait (%p3255_p10), %s429_s15, 512  }
 0x12b   : > { %2374 = vsyncadd (%p3255_p10), %s429_s15, 4294966784  ;;  %s437_s5 = sand.u32 1, %s2560_s18   ;;  %s3208_s7 = sand.u32 1, %s2409_s10  }
 0x12c   : > { %s1632_s19 = sshll.u32 %s3208_s7, 5  ;;  %s438_s30 = scalar_lea.sflag [#allocation9], %s437_s5 }
 0x12d   : > { %s2903_s24 = scalar_lea.vmem [#allocation8], %s1632_s19 }
 0x12e   : > { %2376 = dma.done.wait (%p2825_p13), %s438_s30, 512  }
 0x12f   : > { %2378 = vsyncadd (%p2825_p13), %s438_s30, 4294966784  ;;  %p3256_p12 = scmp.eq.s32.totalorder %s2560_s18, 0 }
 0x131   : > { %2380 = dma.done.wait (%p3256_p12), [#allocation9], 512   ;;  %p3257_p0 = pmov %p3256_p12 }
 0x133   : > { %2382 = vsyncadd (%p3257_p0), [#allocation9], 4294966784  ;;  %p3258_p2 = pmov %p3257_p0 }
 0x134   : > { %p3259_p1 = pmov %p3257_p0 }
 0x135   : > { %2384 = dma.done.wait (%p3258_p2), [#allocation12], 528  }
 0x136   : > { %2386 = vsyncadd (%p3259_p1), [#allocation12], 4294966768  ;;  %p3260_p7 = pmov %p3257_p0 }
 0x137   : > { %p3261_p11 = pmov %p3257_p0 }
 0x138   : > { %2388 = dma.done.wait (%p3260_p7), [#allocation15], 528  }
 0x139   : > { %2390 = vsyncadd (%p3261_p11), [#allocation15], 4294966768  ;;  %p3262_p13 = pmov %p3257_p0 }
 0x13a   : > { %p3263_p6 = pmov %p3257_p0 }
 0x13b   : > { %2392 = dma.done.wait (%p3262_p13), [#allocation18], 16  }
 0x13c   : > { %2394 = vsyncadd (%p3263_p6), [#allocation18], 4294967280  ;;  %s2925_s0 = scalar_lea.vmem [#allocation19], %s1631_s25  ;;  %s2927_s9 = scalar_lea.vmem [#allocation20], %s1632_s19 }
 0x13d   : > { %s3264_s2 = sld [smem:[#allocation31_spill]] }
 0x143   : > { %p1641_p3 = scmp.ne.s32.totalorder %s3264_s2, 0 }
 0x144   : > { %vm520_vm0 = vcmask (!%p1641_p3), 261120   ;;  %v2449_v0 = vmov (!%p1641_p3), 0.0  }
 0x145   : > { %519 = sbr.rel (%p1641_p3) target bundleno = 332 (0x14c), region = 88  ;;  %521 = vst.msk [vmem:[#allocation2] sm:$0xff] (!%p1641_p3), %vm520_vm0, %v2449_v0 }
 0x14c PF: > { %v526_v1 = vld [vmem:[#allocation10] sm:$0xff]  ;;  %v527_v2 = vld [vmem:[#allocation10 + $0x8] sm:$0xff]  ;;  %v528_v3 = vld [vmem:[#allocation10 + $0x10] sm:$0xff]  ;;  %vm537_vm1 = vcmask 261120   ;;  %s2450_s18 = smov 32   ;;  %v2451_v20 = vmov 0.0|0.0  }
 0x14d   : > { %v1791_v4 = vpack.c.bf16 %v527_v2, %v526_v1  ;;  %v529_v5 = vld [vmem:[#allocation10 + $0x18] sm:$0xff]  ;;  %v522_v6 = vld [vmem:[%s2893_s6] sm:$0xff]  ;;  %v757_v9 = vld [vmem:[#allocation16 + $0x8] sm:$0xff]  ;;  %s2452_s29 = smov 64   ;;  %vm2453_vm2 = vmmov 0   ;;  %v2454_v28 = vmov 0.0  }
 0x14e   : > { %v1795_v7 = vpack.c.bf16 %v529_v5, %v528_v3  ;;  %1727 = vmatprep.mubr.msk.f32.mxu0 %vm537_vm1, %v522_v6  ;;  %v756_v8 = vld [vmem:[#allocation16] sm:$0xff]  ;;  %v646_v13 = vld [vmem:[#allocation11 + $0x10] sm:$0xff]  ;;  %v647_v14 = vld [vmem:[#allocation11 + $0x18] sm:$0xff]  ;;  %vm635_vm3 = vcmask 392192   ;;  %s2455_s20 = smov 96   ;;  %s2456_s23 = smov 48  }
 0x14f   : > { %1792 = vmatprep.subr.bf16.mxu0 %v1791_v4  ;;  %v1654_v10 = vld [vmem:[#allocation17] ss:$0 sm:$0xff]  ;;  %v645_v12 = vld [vmem:[#allocation11 + $0x8] sm:$0xff]  ;;  %v1803_v17 = vpack.c.bf16 %v647_v14, %v646_v13  ;;  %v2936_v19 = vpack.c.bf16 %v757_v9, %v756_v8  ;;  %v524_v21 = vld [vmem:[%s2893_s6 + $0x10] sm:$0xff]  ;;  %s2457_s25 = smov 80   ;;  %s2458_s15 = smov 16  }
 0x150   : > { %1794 = vmatpush3.bf16.msra.mxu0 %v1791_v4  ;;  %v644_v11 = vld [vmem:[#allocation11] sm:$0xff]  ;;  %848 = vrot.lane.b32.xlu0 %v1654_v10, %s2450_s18  ;;  %v523_v18 = vld [vmem:[%s2893_s6 + $0x8] sm:$0xff]  ;;  %v758_v22 = vld [vmem:[#allocation16 + $0x10] sm:$0xff]  ;;  %vm914_vm4 = vcmask 130048   ;;  %s3265_s5 = sld [smem:[#allocation31_spill]]  ;;  %s1395_s30 = sshll.u32 %s2925_s0, 4  ;;  %s3074_s30 = int_to_ptr.vmem [resolvable:$true] %s1395_s30 }
 0x151   : > { %1796 = vmatprep.subr.bf16.mxu0 %v1795_v7  ;;  %v1799_v15 = vpack.c.bf16 %v645_v12, %v644_v11  ;;  %v640_v16 = vld [vmem:[%s2903_s24] sm:$0xff]  ;;  %v525_v24 = vld [vmem:[%s2893_s6 + $0x18] sm:$0xff]  ;;  %v641_v26 = vld [vmem:[%s2903_s24 + $0x8] sm:$0xff]  ;;  %s2459_s6 = smov 112   ;;  %p3267_p8 = scmp.ne.s32.totalorder %s3237_s21, 0 }
 0x152   : > { %1741 = vmatprep.mubr.msk.f32.mxu1 %vm537_vm1, %v640_v16  ;;  %v759_v23 = vld [vmem:[#allocation16 + $0x18] sm:$0xff]  ;;  %v642_v27 = vld [vmem:[%s2903_s24 + $0x10] sm:$0xff] }
 0x153   : > { %1800 = vmatprep.subr.bf16.mxu1 %v1799_v15  ;;  %v2944_v25 = vpack.c.bf16 %v759_v23, %v758_v22  ;;  %v2954_v29 = vld [vmem:[#allocation2] sm:$0xff]  ;;  %v1642_v31 = vld [vmem:[#allocation13] ss:$0 sm:$0xff]  ;;  %v1647_v43 = vld [vmem:[#allocation14] ss:$0 sm:$0xff] }
 0x154   : > { %1798 = vmatpush3.bf16.msra.mxu0 %v1795_v7  ;;  %887 = vrot.lane.b32.xlu0 %v1654_v10, %s2452_s29  ;;  %v643_v30 = vld [vmem:[%s2903_s24 + $0x18] sm:$0xff] }
 0x155   : > { %1807 = vmatprep.subr.bf16.mxu0 %v2451_v20  ;;  %1802 = vmatpush3.bf16.msra.mxu1 %v1799_v15 }
 0x156   : > { %1804 = vmatprep.subr.bf16.mxu1 %v1803_v17  ;;  %s1681_s19 = sshll.u32 %s3265_s5, 9 }
 0x157   : > { %1728 = vmatmul.mubr.msk.f32.vlgmr.msra.gmra.mrb[0].mxu0 %vm537_vm1, %v523_v18 }
 0x158   : > { %1809 = vmatpush3.bf16.msra.mxu0 %v2936_v19  ;;  %1730 = vmatprep.mubr.msk.f32.mxu0 %vm537_vm1, %v524_v21 }
 0x159   : > { %1810 = vmatprep.subr.bf16.mxu0 %v2451_v20  ;;  %1806 = vmatpush3.bf16.msra.mxu1 %v1803_v17 }
 0x15a   : > { %1813 = vmatprep.subr.bf16.mxu1 %v2451_v20 }
 0x15b   : > { %1731 = vmatmul.mubr.msk.f32.gmra.mrb[2].mxu0 %vm537_vm1, %v525_v24 }
 0x15c   : > { %1812 = vmatpush3.bf16.msra.mxu0 %v2944_v25  ;;  %1755 = vmatprep.mubr.msk.f32.mxu0 %vm2453_vm2, %v2454_v28 }
 0x15d   : > { %1742 = vmatmul.mubr.msk.f32.vlgmr.msra.gmra.mrb[0].mxu1 %vm537_vm1, %v641_v26  ;;  %1819 = vmatprep.subr.bf16.mxu0 %v2451_v20 }
 0x15e   : > { %1744 = vmatprep.mubr.msk.f32.mxu1 %vm537_vm1, %v642_v27  ;;  %1815 = vmatpush3.bf16.msra.mxu1 %v2936_v19 }
 0x15f   : > { %1756 = vmatmul.mubr.msk.f32.vlgmr.msra.gmra.mrb[4].mxu0 %vm537_vm1, %v2954_v29  ;;  %1816 = vmatprep.subr.bf16.mxu1 %v2451_v20 }
 0x160   : > { %1821 = vmatpush3.bf16.msra.mxu0 %v2936_v19  ;;  %1777 = vmatprep.mubr.msk.f32.mxu0 %vm2453_vm2, %v2454_v28 }
 0x161   : > { %1745 = vmatmul.mubr.msk.f32.gmra.mrb[2].mxu1 %vm537_vm1, %v643_v30  ;;  %1822 = vmatprep.subr.bf16.mxu0 %v2451_v20 }
 0x162   : > { %1818 = vmatpush3.bf16.msra.mxu1 %v2944_v25  ;;  %1766 = vmatprep.mubr.msk.f32.mxu1 %vm2453_vm2, %v2454_v28 }
 0x163   : > { %1825 = vmatprep.subr.bf16.mxu1 %v2451_v20 }
 0x164   : > { %1824 = vmatpush3.bf16.msra.mxu0 %v2944_v25 }
 0x1c2   : > { %v2974_v33 = vpop.permute.xlu0 %848 }
 0x1c6   : > { %v2978_v41 = vpop.permute.xlu0 %887 }
 0x22a   : > { %v1729_v32 = vpop.f32.mrb[0].mxu0 }
 0x22b   : > { %v622_v34 = vadd.f32 %v1729_v32, %v1642_v31  ;;  %v616_v35 = vpop.f32.mrb[1].mxu0 }
 0x22c   : > { %v617_v36 = vadd.f32 %v1642_v31, %v616_v35 }
 0x22d   : > { %637 = vst.msk [vmem:[#allocation3 + $0x8] sm:$0xff] %vm635_vm3, %v622_v34 }
 0x22e   : > { %636 = vst.msk [vmem:[#allocation3] sm:$0xff] %vm635_vm3, %v617_v36  ;;  %v1732_v37 = vpop.f32.mrb[2].mxu0 }
 0x22f   : > { %v632_v38 = vadd.f32 %v1732_v37, %v1642_v31  ;;  %v626_v39 = vpop.f32.mrb[3].mxu0 }
 0x230   : > { %v627_v40 = vadd.f32 %v1642_v31, %v626_v39  ;;  %v1743_v42 = vpop.f32.mrb[0].mxu1 }
 0x231   : > { %639 = vst.msk [vmem:[#allocation3 + $0x18] sm:$0xff] %vm635_vm3, %v632_v38  ;;  %v739_v44 = vadd.f32 %v1743_v42, %v1647_v43  ;;  %v733_v45 = vpop.f32.mrb[1].mxu1 }
 0x232   : > { %638 = vst.msk [vmem:[#allocation3 + $0x10] sm:$0xff] %vm635_vm3, %v627_v40  ;;  %v831_v46 = vpop.f32.mrb[4].mxu0  ;;  %v734_v47 = vadd.f32 %v1647_v43, %v733_v45 }
 0x233   : > { %v1757_v48 = vpop.f32.mrb[5].mxu0  ;;  %v851_v49 = vadd.f32 %v2974_v33, %v831_v46  ;;  %v890_v50 = vadd.f32 %v2978_v41, %v831_v46  ;;  %753 = vst.msk [vmem:[#allocation4 + $0x8] sm:$0xff] %vm635_vm3, %v739_v44 }
 0x234   : > { %752 = vst.msk [vmem:[#allocation4] sm:$0xff] %vm635_vm3, %v734_v47  ;;  %v1746_v51 = vpop.f32.mrb[2].mxu1 }
 0x235   : > { %853 = vrot.lane.b32.xlu1 %v851_v49, %s2455_s20  ;;  %892 = vrot.lane.b32.xlu0 %v890_v50, %s2456_s23  ;;  %v749_v52 = vadd.f32 %v1746_v51, %v1647_v43  ;;  %v743_v53 = vpop.f32.mrb[3].mxu1  ;;  %v835_v55 = vld [vmem:[#allocation3] sm:$0xff] }
 0x236   : > { %v744_v54 = vadd.f32 %v1647_v43, %v743_v53  ;;  %v836_v56 = vadd.f32 %v835_v55, %v831_v46 }
 0x237   : > { %755 = vst.msk [vmem:[#allocation4 + $0x18] sm:$0xff] %vm635_vm3, %v749_v52 }
 0x238   : > { %754 = vst.msk [vmem:[#allocation4 + $0x10] sm:$0xff] %vm635_vm3, %v744_v54  ;;  %v1653_v57 = vmul.f32 -1.442695, %v836_v56 }
 0x239   : > { %877 = vrot.lane.b32.xlu1 %v831_v46, %s2457_s25 }
 0x23a   : > { %2003 = vpow2.f32 %v1653_v57 }
 0x23e   : > { %v875_v63 = vld [vmem:[#allocation4 + $0x18] sm:$0xff] }
 0x244   : > { %v2004_v58 = vpop.eup %2003 }
 0x245   : > { %v840_v59 = vadd.f32 1.0, %v2004_v58 }
 0x247   : > { %2005 = vrcp.f32 %v840_v59 }
 0x251   : > { %v2006_v60 = vpop.eup %2005 }
 0x252   : > { %v863_v15 = vsub.f32 1.0, %v2006_v60 }
 0x2a7   : > { %v854_v61 = vpop.permute.xlu1 %853  ;;  %v893_v6 = vpop.permute.xlu0 %892 }
 0x2a8   : > { %v856_v62 = vmul.f32 %v2006_v60, %v854_v61 }
 0x2aa   : > { %858 = vrot.lane.b32.xlu1 %v856_v62, %s2450_s18 }
 0x2ab   : > { %v878_v0 = vpop.permute.xlu1 %877 }
 0x2ac   : > { %v880_v1 = vadd.f32 %v878_v0, %v875_v63 }
 0x2ae   : > { %v1655_v2 = vmul.f32 -1.442695, %v880_v1 }
 0x2b0   : > { %2007 = vpow2.f32 %v1655_v2 }
 0x2ba   : > { %v2008_v3 = vpop.eup %2007 }
 0x2bb   : > { %v884_v4 = vadd.f32 1.0, %v2008_v3 }
 0x2bd   : > { %2009 = vrcp.f32 %v884_v4 }
 0x2c7   : > { %v2010_v5 = vpop.eup %2009 }
 0x2c8   : > { %v895_v7 = vmul.f32 %v2010_v5, %v893_v6  ;;  %v902_v23 = vsub.f32 1.0, %v2010_v5  ;;  %v908_v26 = vmul.f32 %v2010_v5, %v2954_v29 }
 0x2ca   : > { %897 = vrot.lane.b32.xlu0 %v895_v7, %s2450_s18 }
 0x2ce   : > { %869 = vrot.lane.b32.xlu0 %v2954_v29, %s2458_s15 }
 0x31c   : > { %v859_v8 = vpop.permute.xlu1 %858 }
 0x31d   : > { %v861_v9 = vadd.f32 %v859_v8, %v835_v55 }
 0x31f   : > { %2011 = vtanh.f32 %v861_v9  ;;  %v1148_v9 = vld [vmem:[#allocation3 + $0x10] sm:$0xff] }
 0x329   : > { %v2012_v10 = vpop.eup %2011 }
 0x32a   : > { %865 = vrot.lane.b32.xlu1 %v2012_v10, %s2459_s6 }
 0x33c   : > { %v898_v11 = vpop.permute.xlu0 %897 }
 0x33d   : > { %v900_v12 = vadd.f32 %v898_v11, %v875_v63 }
 0x33f   : > { %2013 = vtanh.f32 %v900_v12 }
 0x340   : > { %v870_v14 = vpop.permute.xlu0 %869 }
 0x341   : > { %v872_v17 = vmul.f32 %v2006_v60, %v870_v14  ;;  %v1180_v14 = vld [vmem:[#allocation4 + $0x8] sm:$0xff] }
 0x349   : > { %v2014_v13 = vpop.eup %2013 }
 0x34a   : > { %904 = vrot.lane.b32.xlu1 %v2014_v13, %s2459_s6 }
 0x39c   : > { %v866_v16 = vpop.permute.xlu1 %865 }
 0x39d   : > { %v868_v18 = vmul.f32 %v866_v16, %v863_v15 }
 0x39f   : > { %v873_v21 = vadd.f32 %v872_v17, %v868_v18 }
 0x3a1   : > { %911 = vrot.lane.b32.xlu0 %v873_v21, %s2459_s6 }
 0x3bc   : > { %v905_v22 = vpop.permute.xlu1 %904 }
 0x3bd   : > { %v907_v24 = vmul.f32 %v905_v22, %v902_v23 }
 0x3bf   : > { %v2999_v27 = vadd.f32 %v908_v26, %v907_v24 }
 0x413   : > { %v912_v30 = vpop.permute.xlu0 %911 }
 0x414   : > { %915 = vst.msk [vmem:[%s2925_s0] sm:$0xff] %vm914_vm4, %v912_v30  ;;  %v922_v31 = vsel %vm914_vm4, %v912_v30, %v2999_v27 }
 0x415   : > { %1767 = vmatmul.mubr.msk.f32.vlgmr.msra.gmra.mrb[4].mxu1 %vm537_vm1, %v922_v31 }
 0x416   : > { %1827 = vmatpush3.bf16.msra.mxu1 %v2936_v19  ;;  %1788 = vmatprep.mubr.msk.f32.mxu1 %vm2453_vm2, %v2454_v28  ;;  %v997_v19 = vld [vmem:[#allocation3 + $0x8] sm:$0xff] }
 0x417   : > { %1828 = vmatprep.subr.bf16.mxu1 %v2451_v20 }
 0x41a   : > { %1830 = vmatpush3.bf16.msra.mxu1 %v2944_v25  ;;  %v1029_v25 = vld [vmem:[#allocation4 + $0x10] sm:$0xff] }
 0x4e8   : > { %v992_v29 = vpop.f32.mrb[4].mxu1 }
 0x4e9   : > { %1031 = vrot.lane.b32.xlu0 %v992_v29, %s2457_s25  ;;  %v1768_v32 = vpop.f32.mrb[5].mxu1  ;;  %v1005_v34 = vadd.f32 %v992_v29, %v2974_v33  ;;  %v1041_v35 = vadd.f32 %v992_v29, %v2978_v41  ;;  %v998_v36 = vadd.f32 %v997_v19, %v992_v29 }
 0x4eb   : > { %1007 = vrot.lane.b32.xlu1 %v1005_v34, %s2455_s20  ;;  %v1658_v37 = vmul.f32 -1.442695, %v998_v36 }
 0x4ed   : > { %2015 = vpow2.f32 %v1658_v37 }
 0x4ef   : > { %1043 = vrot.lane.b32.xlu1 %v1041_v35, %s2456_s23 }
 0x4f7   : > { %v2016_v28 = vpop.eup %2015 }
 0x4f8   : > { %v1002_v20 = vadd.f32 1.0, %v2016_v28 }
 0x4fa   : > { %2017 = vrcp.f32 %v1002_v20 }
 0x504   : > { %v2018_v40 = vpop.eup %2017 }
 0x505   : > { %v1017_v57 = vsub.f32 1.0, %v2018_v40 }
 0x55b   : > { %v1032_v38 = vpop.permute.xlu0 %1031 }
 0x55c   : > { %v1034_v39 = vadd.f32 %v1032_v38, %v1029_v25 }
 0x55d   : > { %v1008_v42 = vpop.permute.xlu1 %1007 }
 0x55e   : > { %v1659_v43 = vmul.f32 -1.442695, %v1034_v39  ;;  %v1010_v44 = vmul.f32 %v2018_v40, %v1008_v42 }
 0x560   : > { %2019 = vpow2.f32 %v1659_v43  ;;  %1012 = vrot.lane.b32.xlu0 %v1010_v44, %s2450_s18 }
 0x561   : > { %v1044_v48 = vpop.permute.xlu1 %1043 }
 0x56a   : > { %v2020_v45 = vpop.eup %2019 }
 0x56b   : > { %v1038_v46 = vadd.f32 1.0, %v2020_v45 }
 0x56d   : > { %2021 = vrcp.f32 %v1038_v46 }
 0x577   : > { %v2022_v47 = vpop.eup %2021 }
 0x578   : > { %v1046_v49 = vmul.f32 %v2022_v47, %v1044_v48  ;;  %v1053_v63 = vsub.f32 1.0, %v2022_v47  ;;  %v1059_v1 = vmul.f32 %v2022_v47, %v922_v31 }
 0x57a   : > { %1048 = vrot.lane.b32.xlu1 %v1046_v49, %s2450_s18 }
 0x57e   : > { %1023 = vrot.lane.b32.xlu1 %v922_v31, %s2458_s15 }
 0x5d2   : > { %v1013_v50 = vpop.permute.xlu0 %1012 }
 0x5d3   : > { %v1015_v51 = vadd.f32 %v1013_v50, %v997_v19 }
 0x5d5   : > { %2023 = vtanh.f32 %v1015_v51 }
 0x5df   : > { %v2024_v52 = vpop.eup %2023 }
 0x5e0   : > { %1019 = vrot.lane.b32.xlu0 %v2024_v52, %s2459_s6  ;;  %v1299_v52 = vld [vmem:[#allocation3 + $0x18] sm:$0xff] }
 0x5ec   : > { %v1049_v53 = vpop.permute.xlu1 %1048 }
 0x5ed   : > { %v1051_v54 = vadd.f32 %v1049_v53, %v1029_v25 }
 0x5ef   : > { %2025 = vtanh.f32 %v1051_v54 }
 0x5f0   : > { %v1024_v56 = vpop.permute.xlu1 %1023 }
 0x5f1   : > { %v1026_v59 = vmul.f32 %v2018_v40, %v1024_v56 }
 0x5f9   : > { %v2026_v55 = vpop.eup %2025 }
 0x5fa   : > { %1055 = vrot.lane.b32.xlu0 %v2026_v55, %s2459_s6 }
 0x652   : > { %v1020_v58 = vpop.permute.xlu0 %1019 }
 0x653   : > { %v1022_v60 = vmul.f32 %v1020_v58, %v1017_v57  ;;  %v1330_v57 = vld [vmem:[#allocation4] sm:$0xff] }
 0x655   : > { %v1027_v61 = vadd.f32 %v1026_v59, %v1022_v60 }
 0x657   : > { %1062 = vrot.lane.b32.xlu1 %v1027_v61, %s2459_s6 }
 0x66c   : > { %v1056_v62 = vpop.permute.xlu0 %1055 }
 0x66d   : > { %v1058_v0 = vmul.f32 %v1056_v62, %v1053_v63 }
 0x66f   : > { %v3022_v2 = vadd.f32 %v1059_v1, %v1058_v0 }
 0x6c9   : > { %v1063_v3 = vpop.permute.xlu1 %1062 }
 0x6ca   : > { %1660 = vst.msk [vmem:[%s2925_s0 + $0x8] sm:$0xff] %vm914_vm4, %v1063_v3  ;;  %v1073_v4 = vsel %vm914_vm4, %v1063_v3, %v3022_v2 }
 0x6cb   : > { %1778 = vmatmul.mubr.msk.f32.vlgmr.msra.gmra.mrb[6].mxu0 %vm537_vm1, %v1073_v4 }
 0x79e   : > { %v1143_v5 = vpop.f32.mrb[6].mxu0 }
 0x79f   : > { %1182 = vrot.lane.b32.xlu1 %v1143_v5, %s2457_s25  ;;  %v1779_v6 = vpop.f32.mrb[7].mxu0  ;;  %v1156_v7 = vadd.f32 %v1143_v5, %v2974_v33  ;;  %v1192_v8 = vadd.f32 %v1143_v5, %v2978_v41  ;;  %v1149_v10 = vadd.f32 %v1148_v9, %v1143_v5 }
 0x7a1   : > { %1158 = vrot.lane.b32.xlu0 %v1156_v7, %s2455_s20  ;;  %v1663_v11 = vmul.f32 -1.442695, %v1149_v10 }
 0x7a3   : > { %2027 = vpow2.f32 %v1663_v11 }
 0x7a5   : > { %1194 = vrot.lane.b32.xlu0 %v1192_v8, %s2456_s23 }
 0x7ad   : > { %v2028_v12 = vpop.eup %2027 }
 0x7ae   : > { %v1153_v13 = vadd.f32 1.0, %v2028_v12 }
 0x7b0   : > { %2029 = vrcp.f32 %v1153_v13 }
 0x7ba   : > { %v2030_v17 = vpop.eup %2029 }
 0x7bb   : > { %v1168_v28 = vsub.f32 1.0, %v2030_v17 }
 0x811   : > { %v1183_v15 = vpop.permute.xlu1 %1182 }
 0x812   : > { %v1185_v16 = vadd.f32 %v1183_v15, %v1180_v14 }
 0x813   : > { %v1159_v18 = vpop.permute.xlu0 %1158 }
 0x814   : > { %v1664_v21 = vmul.f32 -1.442695, %v1185_v16  ;;  %v1161_v22 = vmul.f32 %v2030_v17, %v1159_v18 }
 0x816   : > { %2031 = vpow2.f32 %v1664_v21  ;;  %1163 = vrot.lane.b32.xlu1 %v1161_v22, %s2450_s18 }
 0x817   : > { %v1195_v30 = vpop.permute.xlu0 %1194 }
 0x820   : > { %v2032_v23 = vpop.eup %2031 }
 0x821   : > { %v1189_v24 = vadd.f32 1.0, %v2032_v23 }
 0x823   : > { %2033 = vrcp.f32 %v1189_v24 }
 0x82d   : > { %v2034_v26 = vpop.eup %2033 }
 0x82e   : > { %v1197_v31 = vmul.f32 %v2034_v26, %v1195_v30  ;;  %v1204_v42 = vsub.f32 1.0, %v2034_v26  ;;  %v1210_v44 = vmul.f32 %v2034_v26, %v1073_v4 }
 0x830   : > { %1199 = vrot.lane.b32.xlu0 %v1197_v31, %s2450_s18 }
 0x834   : > { %1174 = vrot.lane.b32.xlu0 %v1073_v4, %s2458_s15 }
 0x888   : > { %v1164_v29 = vpop.permute.xlu1 %1163 }
 0x889   : > { %v1166_v32 = vadd.f32 %v1164_v29, %v1148_v9 }
 0x88b   : > { %2035 = vtanh.f32 %v1166_v32 }
 0x895   : > { %v2036_v34 = vpop.eup %2035 }
 0x896   : > { %1170 = vrot.lane.b32.xlu1 %v2036_v34, %s2459_s6 }
 0x8a2   : > { %v1200_v35 = vpop.permute.xlu0 %1199 }
 0x8a3   : > { %v1202_v19 = vadd.f32 %v1200_v35, %v1180_v14 }
 0x8a5   : > { %2037 = vtanh.f32 %v1202_v19 }
 0x8a6   : > { %v1175_v37 = vpop.permute.xlu0 %1174 }
 0x8a7   : > { %v1177_v25 = vmul.f32 %v2030_v17, %v1175_v37 }
 0x8af   : > { %v2038_v36 = vpop.eup %2037 }
 0x8b0   : > { %1206 = vrot.lane.b32.xlu1 %v2038_v36, %s2459_s6 }
 0x908   : > { %v1171_v20 = vpop.permute.xlu1 %1170 }
 0x909   : > { %v1173_v38 = vmul.f32 %v1171_v20, %v1168_v28 }
 0x90b   : > { %v1178_v39 = vadd.f32 %v1177_v25, %v1173_v38 }
 0x90d   : > { %1213 = vrot.lane.b32.xlu0 %v1178_v39, %s2459_s6 }
 0x922   : > { %v1207_v40 = vpop.permute.xlu1 %1206 }
 0x923   : > { %v1209_v43 = vmul.f32 %v1207_v40, %v1204_v42 }
 0x925   : > { %v1211_v45 = vadd.f32 %v1210_v44, %v1209_v43 }
 0x97f   : > { %v1214_v46 = vpop.permute.xlu0 %1213 }
 0x980   : > { %1665 = vst.msk [vmem:[%s2925_s0 + $0x10] sm:$0xff] %vm914_vm4, %v1214_v46  ;;  %v1224_v47 = vsel %vm914_vm4, %v1214_v46, %v1211_v45 }
 0x981   : > { %1789 = vmatmul.mubr.msk.f32.vlgmr.msra.gmra.mrb[6].mxu1 %vm537_vm1, %v1224_v47 }
 0xa54   : > { %v1294_v48 = vpop.f32.mrb[6].mxu1 }
 0xa55   : > { %1332 = vrot.lane.b32.xlu1 %v1294_v48, %s2457_s25  ;;  %v1790_v49 = vpop.f32.mrb[7].mxu1  ;;  %v1307_v50 = vadd.f32 %v1294_v48, %v2974_v33  ;;  %v1342_v51 = vadd.f32 %v1294_v48, %v2978_v41  ;;  %v1300_v53 = vadd.f32 %v1299_v52, %v1294_v48  ;;  %s2460_s25 = smov [#allocation19]  }
 0xa57   : > { %1309 = vrot.lane.b32.xlu0 %v1307_v50, %s2455_s20  ;;  %v1668_v54 = vmul.f32 -1.442695, %v1300_v53  ;;  %s1376_s20 = scalar_lea.sflag [#allocation7], %s2889_s8 }
 0xa59   : > { %1344 = vrot.lane.b32.xlu1 %v1342_v51, %s2456_s23  ;;  %2039 = vpow2.f32 %v1668_v54  ;;  %s2279_s23 = scalar_lea.vmem %s3074_s30, 512 }
 0xa5a   : > { %p2280_p4 = scmp.ne.s32.totalorder %s3074_s30, %s2279_s23 }
 0xa5c   : > { %p2281_p9 = pnand %p2280_p4, %p3267_p8 }
 0xa5e   : > { %p2282_p5 = pneg %p2281_p9 }
 0xa63   : > { %v2040_v55 = vpop.eup %2039 }
 0xa64   : > { %v1304_v56 = vadd.f32 1.0, %v2040_v55 }
 0xa66   : > { %2041 = vrcp.f32 %v1304_v56 }
 0xa70   : > { %v2042_v60 = vpop.eup %2041 }
 0xac7   : > { %v1333_v58 = vpop.permute.xlu1 %1332 }
 0xac8   : > { %v1335_v59 = vadd.f32 %v1333_v58, %v1330_v57 }
 0xac9   : > { %v1310_v61 = vpop.permute.xlu0 %1309 }
 0xaca   : > { %v1669_v62 = vmul.f32 -1.442695, %v1335_v59  ;;  %v1312_v33 = vmul.f32 %v2042_v60, %v1310_v61 }
 0xacb   : > { %v1345_v1 = vpop.permute.xlu1 %1344 }
 0xacc   : > { %2043 = vpow2.f32 %v1669_v62  ;;  %1314 = vrot.lane.b32.xlu0 %v1312_v33, %s2450_s18 }
 0xad6   : > { %v2044_v41 = vpop.eup %2043 }
 0xad7   : > { %v1339_v63 = vadd.f32 1.0, %v2044_v41 }
 0xad9   : > { %2045 = vrcp.f32 %v1339_v63 }
 0xae3   : > { %v2046_v0 = vpop.eup %2045 }
 0xae4   : > { %v1347_v3 = vmul.f32 %v2046_v0, %v1345_v1  ;;  %v1354_v17 = vsub.f32 1.0, %v2046_v0  ;;  %v1360_v21 = vmul.f32 %v2046_v0, %v1224_v47 }
 0xae6   : > { %1349 = vrot.lane.b32.xlu1 %v1347_v3, %s2450_s18  ;;  %s3266_s18 = sld [smem:[#allocation41_spill]] }
 0xaea   : > { %1325 = vrot.lane.b32.xlu1 %v1224_v47, %s2458_s15  ;;  %s2283_s15 = sshll.u32 %s2460_s25, 4  ;;  %s2284_s15 = int_to_ptr.vmem [resolvable:$false] %s2283_s15 }
 0xaeb   : > { %p2286_p10 = scmp.lt.s32.totalorder %s3074_s30, %s2284_s15 }
 0xaec   : > { %s3072_s29 = scalar_lea.hbm %s3266_s18, %s1681_s19 }
 0xaee   : > { %917 = vrot.lane.b32.xlu1 %v2999_v27, %s2459_s6  ;;  %v1319_v27 = vsub.f32 1.0, %v2042_v60 }
 0xaf2   : > { %1219 = vrot.lane.b32.xlu1 %v1211_v45, %s2459_s6 }
 0xb3e   : > { %v1315_v4 = vpop.permute.xlu0 %1314 }
 0xb3f   : > { %v1317_v5 = vadd.f32 %v1315_v4, %v1299_v52 }
 0xb41   : > { %2047 = vtanh.f32 %v1317_v5 }
 0xb4b   : > { %v2048_v6 = vpop.eup %2047 }
 0xb4c   : > { %1321 = vrot.lane.b32.xlu0 %v2048_v6, %s2459_s6 }
 0xb58   : > { %v1350_v7 = vpop.permute.xlu1 %1349 }
 0xb59   : > { %v1352_v8 = vadd.f32 %v1350_v7, %v1330_v57 }
 0xb5b   : > { %2049 = vtanh.f32 %v1352_v8 }
 0xb5c   : > { %v1326_v9 = vpop.permute.xlu1 %1325 }
 0xb5d   : > { %v1328_v14 = vmul.f32 %v2042_v60, %v1326_v9 }
 0xb60   : > { %v918_v10 = vpop.permute.xlu1 %917 }
 0xb61   : > { %1656 = vst.msk [vmem:[%s2927_s9 + $0x18] sm:$0xff] %vm914_vm4, %v918_v10 }
 0xb64   : > { %v1220_v11 = vpop.permute.xlu1 %1219 }
 0xb65   : > { %v2050_v12 = vpop.eup %2049  ;;  %1666 = vst.msk [vmem:[%s2927_s9 + $0x8] sm:$0xff] %vm914_vm4, %v1220_v11 }
 0xb66   : > { %1356 = vrot.lane.b32.xlu0 %v2050_v12, %s2459_s6 }
 0xb6a   : > { %1068 = vrot.lane.b32.xlu0 %v3022_v2, %s2459_s6 }
 0xbbe   : > { %v1322_v13 = vpop.permute.xlu0 %1321 }
 0xbbf   : > { %v1324_v15 = vmul.f32 %v1322_v13, %v1319_v27 }
 0xbc1   : > { %v1329_v16 = vadd.f32 %v1328_v14, %v1324_v15 }
 0xbc3   : > { %1363 = vrot.lane.b32.xlu0 %v1329_v16, %s2459_s6 }
 0xbd8   : > { %v1357_v18 = vpop.permute.xlu0 %1356 }
 0xbd9   : > { %v1359_v22 = vmul.f32 %v1357_v18, %v1354_v17 }
 0xbdb   : > { %v1361_v23 = vadd.f32 %v1360_v21, %v1359_v22 }
 0xbdc   : > { %v1069_v24 = vpop.permute.xlu0 %1068 }
 0xbdd   : > { %1661 = vst.msk [vmem:[%s2927_s9 + $0x10] sm:$0xff] %vm914_vm4, %v1069_v24  ;;  %1369 = vrot.lane.b32.xlu1 %v1361_v23, %s2459_s6  ;;  %s2285_s6 = scalar_lea.vmem %s2284_s15, 1024 }
 0xbde   : > { %p2287_p12 = scmp.lt.s32.totalorder %s2285_s6, %s2279_s23 }
 0xbe0   : > { %p2288_p0 = por %p2287_p12, %p2286_p10 }
 0xbe2   : > { %p2289_p2 = pnand %p2288_p0, %p2282_p5 }
 0xc35   : > { %v1364_v2 = vpop.permute.xlu0 %1363 }
 0xc36   : > { %1670 = vst.msk [vmem:[%s2925_s0 + $0x18] sm:$0xff] %vm914_vm4, %v1364_v2  ;;  %v1373_v26 = vsel %vm914_vm4, %v1364_v2, %v1361_v23 }
 0xc37   : > { %1374 = vst.msk [vmem:[#allocation2] sm:$0xff] %vm537_vm1, %v1373_v26 }
 0xc38   : > { %2292 = shalt.err (!%p2289_p2)
}
 0xc39   : > { %s2293_s0 = scalar_lea.hbm %s3072_s29, 512  ;;  %s2297_s2 = scalar_lea.hbm %s3266_s18, 2048 }
 0xc3a   : > { %p2294_p1 = scmp.ne.s32.totalorder %s3072_s29, %s2293_s0  ;;  %p2298_p13 = scmp.lt.u32.totalorder %s3072_s29, %s3266_s18 }
 0xc3b   : > { %p2299_p6 = scmp.lt.u32.totalorder %s2297_s2, %s2293_s0  ;;  %p2301_p4 = scmp.lt.u32.totalorder %s2293_s0, %s3072_s29 }
 0xc3c   : > { %p2295_p7 = pnand %p2294_p1, %p3267_p8 }
 0xc3d   : > { %p2300_p3 = por %p2299_p6, %p2298_p13 }
 0xc3e   : > { %p2296_p11 = pneg %p2295_p7 }
 0xc3f   : > { %p2302_p9 = por %p2301_p4, %p2300_p3 }
 0xc41   : > { %p2303_p5 = pnand %p2302_p9, %p2296_p11 }
 0xc43   : > { %2306 = shalt.err (!%p2303_p5)
}
 0xc44   : > { %s2461_s23 = smov 128   ;;  %s2462_s6 = smov 8  }
 0xc45   : > { %1859 = dma.vmem_to_hbm [thread:$0]  (%p3267_p8), %s3074_s30, 512, %s3072_s29, %s1376_s20, %s2461_s23, %s2461_s23, %s2462_s6  }
 0xc46   : > { %s1405_s0 = ssub.s32 3, %s3265_s5  ;;  %s1413_s24 = sshll.u32 %s2927_s9, 4  ;;  %s3114_s24 = int_to_ptr.vmem [resolvable:$true] %s1413_s24 }
 0xc47   : > { %s1682_s19 = sshll.u32 %s1405_s0, 9  ;;  %s3268_s15 = sld [smem:[#allocation42_spill]] }
 0xc48   : > { %s3270_s21 = sand.u32 1, %s2409_s10   ;;  %s2307_s8 = scalar_lea.vmem %s3114_s24, 512 }
 0xc49   : > { %s3120_s18 = scalar_lea.sflag [#allocation21], %s3270_s21  ;;  %p2308_p8 = scmp.ne.s32.totalorder %s3114_s24, %s2307_s8 }
 0xc4a   : > { %p3271_p10 = scmp.ne.s32.totalorder %s3248_s3, 0  ;;  %s2463_s5 = smov [#allocation20]  }
 0xc4b   : > { %s2311_s30 = sshll.u32 %s2463_s5, 4  ;;  %s2312_s30 = int_to_ptr.vmem [resolvable:$false] %s2311_s30 }
 0xc4c   : > { %p2309_p12 = pnand %p2308_p8, %p3271_p10  ;;  %s2313_s29 = scalar_lea.vmem %s2312_s30, 1024 }
 0xc4d   : > { %s3269_s7 = smov %s3268_s15  ;;  %s3112_s4 = scalar_lea.hbm %s3268_s15, %s1682_s19 }
 0xc4e   : > { %p2310_p0 = pneg %p2309_p12  ;;  %p2314_p2 = scmp.lt.s32.totalorder %s3114_s24, %s2312_s30 }
 0xc4f   : > { %v1370_v30 = vpop.permute.xlu1 %1369  ;;  %p2315_p1 = scmp.lt.s32.totalorder %s2313_s29, %s2307_s8 }
 0xc50   : > { %1372 = vst.msk [vmem:[%s2927_s9] sm:$0xff] %vm914_vm4, %v1370_v30 }
 0xc51   : > { %p2316_p7 = por %p2315_p1, %p2314_p2 }
 0xc53   : > { %p2317_p11 = pnand %p2316_p7, %p2310_p0 }
 0xc55   : > { %2320 = shalt.err (!%p2317_p11)
}
 0xc56   : > { %s2321_s9 = scalar_lea.hbm %s3112_s4, 512  ;;  %s2325_s19 = scalar_lea.hbm %s3269_s7, 2048 }
 0xc57   : > { %p2322_p13 = scmp.ne.s32.totalorder %s3112_s4, %s2321_s9  ;;  %p2326_p4 = scmp.lt.u32.totalorder %s3112_s4, %s3269_s7 }
 0xc58   : > { %p2327_p9 = scmp.lt.u32.totalorder %s2325_s19, %s2321_s9  ;;  %p2329_p8 = scmp.lt.u32.totalorder %s2321_s9, %s3112_s4 }
 0xc59   : > { %p2323_p6 = pnand %p2322_p13, %p3271_p10 }
 0xc5a   : > { %p2328_p5 = por %p2327_p9, %p2326_p4 }
 0xc5b   : > { %p2324_p3 = pneg %p2323_p6 }
 0xc5c   : > { %p2330_p12 = por %p2329_p8, %p2328_p5 }
 0xc5e   : > { %p2331_p0 = pnand %p2330_p12, %p2324_p3 }
 0xc60   : > { %2334 = shalt.err (!%p2331_p0)
}
 0xc61   : > { %1860 = dma.vmem_to_hbm [thread:$0]  (%p3271_p10), %s3114_s24, 512, %s3112_s4, %s3120_s18, %s2461_s23, %s2461_s23, %s2462_s6  }
 0xc62 PF: > { %p1909_p2 = scmp.ge.s32.totalorder %s2437_s17, 2  ;;  %s1428_s15 = sand.u32 1, %s2417_s12  }
 0xc63   : > { %p3272_p1 = scmp.ne.s32.totalorder %s3239_s26, 0  ;;  %s1429_s21 = scalar_lea.sflag [#allocation7], %s1428_s15 }
 0xc65   : > { %p1890_p7 = pnand %p1909_p2, %p3272_p1 }
 0xc67   : > { %2396 = dma.done.wait (!%p1890_p7), %s1429_s21, 512  }
 0xc68   : > { %2398 = vsyncadd (!%p1890_p7), %s1429_s21, 4294966784  ;;  %s3273_s8 = sld [smem:[#allocation30_spill]]  ;;  %p3274_p11 = scmp.ne.s32.totalorder %s3249_s28, 0 }
 0xc6a   : > { %p1893_p13 = pnand %p1909_p2, %p3274_p11 }
 0xc6e   : > { %s1437_s3 = sand.u32 1, %s3273_s8  }
 0xc6f   : > { %s1438_s5 = scalar_lea.sflag [#allocation21], %s1437_s3 }
 0xc70   : > { %2400 = dma.done.wait (!%p1893_p13), %s1438_s5, 512  }
 0xc71   : > { %2402 = vsyncadd (!%p1893_p13), %s1438_s5, 4294966784  ;;  %s35_s17 = sadd.s32 1, %s2437_s17   ;;  %s3275_s30 = smov %s2409_s10 }
 0xc72   : > { %p32_p10 = scmp.ge.s32.totalorder %s35_s17, 6   ;;  %s3276_s10 = smov %s2413_s11 }
 0xc73   : > { %s3277_s11 = smov %s2819_s27  ;;  %s3278_s12 = smov %s2421_s13 }
 0xc74   : > { %s3279_s13 = smov %s2425_s14  ;;  %s3280_s14 = smov %s2753_s1 }
 0xc75   : > { %s3281_s15 = smov %s2433_s16  ;;  %s3282_s16 = smov %s3284_s22 }
 0xc76   :  { %34 = sbr.rel (!%p32_p10) target bundleno = 26 (0x1a), region = 167 }
 0xc7d   :  { %1443 = vsyncpa [#allocation6], 1 }
 0xc7e   :  { %1445 = vsyncpa [#allocation6 + $0x1], 1 }
 0xc7f   :  { %1446 = vsyncpa [#allocation9], 1 }
 0xc80   :  { %1448 = vsyncpa [#allocation9 + $0x1], 1 }
 0xc81   :  { %1449 = vsyncpa [#allocation12], 1 }
 0xc82   :  { %1450 = vsyncpa [#allocation15], 1 }
 0xc83   :  { %1451 = vsyncpa [#allocation18], 1 }
 0xc84   :  { %1452 = vsyncpa [#allocation7], 1 }
 0xc85   :  { %1454 = vsyncpa [#allocation7 + $0x1], 1 }
 0xc86   :  { %1455 = vsyncpa [#allocation21], 1 }
 0xc87   :  { %1457 = vsyncpa [#allocation21 + $0x1], 1 }

</bundles_post_ra>
